<compile_context>
chip_gen: v6e
topology: v6e:2x2x1
jax: 0.10.0
libtpu: 0.0.40
codegen_flags: <defaults>
</compile_context>

<pallas_src>
import functools
import math

import jax
import jax.numpy as jnp
from jax.experimental import pallas as pl
from jax.experimental.pallas import tpu as pltpu


# ----------------------------------------------------------------------------- helpers
def _erf_approx(x):
    # Abramowitz & Stegun 7.1.26 polynomial erf, |err| < 1.5e-7 (plus approx-recip noise).
    # exp() and the approximate reciprocal both land on the EUP slot.
    a1, a2, a3, a4, a5 = 0.254829592, -0.284496736, 1.421413741, -1.453152027, 1.061405429
    p = 0.3275911
    sign = jnp.where(x >= 0.0, 1.0, -1.0)
    ax = jnp.abs(x)
    t = pl.reciprocal(1.0 + p * ax, approx=True)
    poly = ((((a5 * t + a4) * t + a3) * t + a2) * t + a1) * t
    return sign * (1.0 - poly * jnp.exp(-ax * ax))


def _gelu_exact(x):
    # PyTorch F.gelu(approximate='none') == 0.5*x*(1+erf(x/sqrt(2)))
    return 0.5 * x * (1.0 + _erf_approx(x * (1.0 / math.sqrt(2.0))))


def _layernorm(x, w, b, eps):
    mu = jnp.mean(x, axis=-1, keepdims=True)
    var = jnp.mean((x - mu) ** 2, axis=-1, keepdims=True)
    return (x - mu) * jax.lax.rsqrt(var + eps) * w + b


# ----------------------------------------------------------------------------- kernel
def _jepa_kernel(
    lat_ref, mask_ref, pos_ref,
    w_in_ref, b_in_ref, tok_ref,
    ln1w_ref, ln1b_ref, wqkv_ref, bqkv_ref, wo_ref, bo_ref,
    ln2w_ref, ln2b_ref, w1_ref, b1_ref, w2_ref, b2_ref,
    lnfw_ref, lnfb_ref, wout_ref, bout_ref,
    out_ref,
    h_ref,
    *, num_heads: int, tb: int, n: int,
):
    l = pl.program_id(1)
    H = h_ref.shape[-1]
    hd = H // num_heads
    m = tb * n
    scale = 1.0 / math.sqrt(hd)

    # ---- first layer step of this batch block: embed ----
    @pl.when(l == 0)
    def _embed():
        c_in = lat_ref.shape[-1]
        x = lat_ref[...].reshape(m, c_in).astype(jnp.bfloat16)
        h0 = jnp.dot(x, w_in_ref[...], preferred_element_type=jnp.float32) + b_in_ref[...]
        h0 = h0.reshape(tb, n, H)
        h0 = h0 + mask_ref[...] * tok_ref[...]   # x[predictor_targets] += prediction_token
        h0 = h0 + pos_ref[...]                   # positional encodings
        h_ref[...] = h0.reshape(m, H)

    # ---- one transformer encoder layer (pre-LN, eps=1e-5) ----
    h = h_ref[...]                               # [m, H] f32 residual stream

    # self-attention block
    xn = _layernorm(h, ln1w_ref[0], ln1b_ref[0], 1e-5)
    qkv = jnp.dot(xn.astype(jnp.bfloat16), wqkv_ref[0],
                  preferred_element_type=jnp.float32) + bqkv_ref[0]
    q = (qkv[:, 0 * H:1 * H] * scale).astype(jnp.bfloat16).reshape(tb, n, H)
    k = qkv[:, 1 * H:2 * H].astype(jnp.bfloat16).reshape(tb, n, H)
    v = qkv[:, 2 * H:3 * H].astype(jnp.bfloat16).reshape(tb, n, H)

    # Per-head context projected straight through its wo slice and accumulated in
    # registers: no attn scratch, no masked lane stores, same total MXU work.
    attn = jnp.zeros((m, H), jnp.float32)
    for hh in range(num_heads):                  # static unroll; each head TB-batched
        lo = hh * hd
        s = jnp.einsum("bqd,bkd->bqk", q[:, :, lo:lo + hd], k[:, :, lo:lo + hd],
                       preferred_element_type=jnp.float32)          # [tb, n, n]
        s = s - jnp.max(s, axis=-1, keepdims=True)
        p = jnp.exp(s)
        p = p * pl.reciprocal(jnp.sum(p, axis=-1, keepdims=True), approx=True)
        o = jnp.einsum("bqk,bkd->bqd", p.astype(jnp.bfloat16), v[:, :, lo:lo + hd],
                       preferred_element_type=jnp.float32)          # [tb, n, hd]
        attn = attn + jnp.dot(o.reshape(m, hd).astype(jnp.bfloat16), wo_ref[0, hh],
                              preferred_element_type=jnp.float32)
    h = h + attn + bo_ref[0]

    # feed-forward block (GELU math kept in f32: correct + v5e-safe; bf16 before matmul)
    xn2 = _layernorm(h, ln2w_ref[0], ln2b_ref[0], 1e-5)
    ff = jnp.dot(xn2.astype(jnp.bfloat16), w1_ref[0],
                 preferred_element_type=jnp.float32) + b1_ref[0]
    ff = _gelu_exact(ff)
    ff = jnp.dot(ff.astype(jnp.bfloat16), w2_ref[0],
                 preferred_element_type=jnp.float32) + b2_ref[0]
    h = h + ff
    h_ref[...] = h

    # ---- last layer step: predictor_norm (eps=1e-6) + predictor_proj ----
    @pl.when(l == pl.num_programs(1) - 1)
    def _head():
        hn = _layernorm(h_ref[...], lnfw_ref[...], lnfb_ref[...], 1e-6)
        y = jnp.dot(hn.astype(jnp.bfloat16), wout_ref[...],
                    preferred_element_type=jnp.float32) + bout_ref[...]
        out_ref[...] = y.reshape(tb, n, -1).astype(out_ref.dtype)   # lane-dense bf16 store


# ----------------------------------------------------------------------------- wrapper
def _vmem_limit_bytes() -> int:
    """Generation-aware scoped-VMEM request (v5e/v6e: 96 MiB, v7x: 48 MiB, else 48 MiB)."""
    try:
        cap = int(pltpu.get_tpu_info().vmem_capacity_bytes)
    except Exception:
        cap = 64 * 1024 * 1024
    return max(32 * 1024 * 1024, min(int(cap * 0.75), 96 * 1024 * 1024))


def _pick_batch_tile(batch: int, n: int, hidden: int, dff: int,
                     act_budget_bytes: int, max_rows: int = 1024) -> int:
    """Largest divisor of `batch` whose flattened row count fits the activation budget.

    Note: if `batch` is prime / awkward this degrades to tb=1 (weights re-streamed per
    sequence) — a perf cliff, not a correctness issue; pad the batch upstream if needed.
    """
    per_row = 4 * (hidden          # f32 hidden-state carry scratch
                   + 3 * hidden    # qkv activation
                   + dff           # GELU temp
                   + 2 * hidden)   # residual / attention temporaries
    best = 1
    for d in range(1, batch + 1):
        if batch % d:
            continue
        rows = d * n
        if rows <= max_rows and rows * per_row <= act_budget_bytes:
            best = d
    return best


def jepa_predictor_forward(latents, predictor_targets, params, *, depth, num_heads):
    B, N, C = latents.shape
    H = params["w_in"].shape[1]
    dff = params["w1"].shape[-1]
    hd = H // num_heads
    C_pad = pl.cdiv(C, 128) * 128                       # lane-dense output stores

    # VMEM budget: double-buffered per-layer weight stream + resident constants, the
    # rest goes to the batch tile's activations (push m toward the compute roofline).
    vmem_limit = _vmem_limit_bytes()
    layer_bytes = 2 * ((3 * H * H + H * H + 2 * H * dff) * 2          # bf16 weights
                       + (3 * H + H + dff + H + 4 * H) * 4)           # f32 biases / LN
    const_bytes = 2 * ((C * H + H * C_pad) * 2 + (N * H + 8 * H + 2 * C_pad) * 4)
    act_budget = max(int(0.5 * vmem_limit) - layer_bytes - const_bytes, 64 * 1024)
    tb = _pick_batch_tile(B, N, H, dff, act_budget)
    nb = B // tb

    # mask kept 3-D ([B, N, 1]); tiny, DMA'd once per batch block.
    mask = predictor_targets.astype(jnp.float32)[..., None]

    # bf16 matmul operands (halves weight DMA/VMEM; MXU-native); biases/LN params stay f32.
    w_in = params["w_in"].astype(jnp.bfloat16)
    wqkv = params["wqkv"].astype(jnp.bfloat16)
    wo4 = params["wo"].astype(jnp.bfloat16).reshape(depth, num_heads, hd, H)
    w1 = params["w1"].astype(jnp.bfloat16)
    w2 = params["w2"].astype(jnp.bfloat16)
    wout_p = jnp.zeros((H, C_pad), jnp.bfloat16).at[:, :C].set(params["wout"].astype(jnp.bfloat16))
    bout_p = jnp.zeros((1, C_pad), jnp.float32).at[:, :C].set(params["bout"])

    def per_layer(a):                                   # [depth, X] -> [depth, 1, X]
        return a.reshape(depth, 1, a.shape[-1])

    def const_spec(a):
        nd = a.ndim
        return pl.BlockSpec(a.shape, lambda b, l, _nd=nd: (0,) * _nd)

    def layer_spec(a):                                  # a: [depth, ...]
        nd = a.ndim
        return pl.BlockSpec((1,) + a.shape[1:], lambda b, l, _nd=nd: (l,) + (0,) * (_nd - 1))

    ln1w, ln1b = per_layer(params["ln1w"]), per_layer(params["ln1b"])
    ln2w, ln2b = per_layer(params["ln2w"]), per_layer(params["ln2b"])
    bqkv, bo = per_layer(params["bqkv"]), per_layer(params["bo"])
    b1, b2 = per_layer(params["b1"]), per_layer(params["b2"])

    inputs = [
        latents, mask, params["pos"],
        w_in, params["b_in"], params["tok"],
        ln1w, ln1b, wqkv, bqkv, wo4, bo,
        ln2w, ln2b, w1, b1, w2, b2,
        params["lnfw"], params["lnfb"], wout_p, bout_p,
    ]
    in_specs = [
        pl.BlockSpec((tb, N, C), lambda b, l: (b, 0, 0)),
        pl.BlockSpec((tb, N, 1), lambda b, l: (b, 0, 0)),
        const_spec(params["pos"]),
        const_spec(w_in), const_spec(params["b_in"]), const_spec(params["tok"]),
        layer_spec(ln1w), layer_spec(ln1b), layer_spec(wqkv), layer_spec(bqkv),
        layer_spec(wo4), layer_spec(bo),
        layer_spec(ln2w), layer_spec(ln2b), layer_spec(w1), layer_spec(b1),
        layer_spec(w2), layer_spec(b2),
        const_spec(params["lnfw"]), const_spec(params["lnfb"]),
        const_spec(wout_p), const_spec(bout_p),
    ]

    kernel = functools.partial(_jepa_kernel, num_heads=num_heads, tb=tb, n=N)
    out_padded = pl.pallas_call(
        kernel,
        out_shape=jax.ShapeDtypeStruct((B, N, C_pad), jnp.bfloat16),
        grid_spec=pltpu.PrefetchScalarGridSpec(
            num_scalar_prefetch=0,
            grid=(nb, depth),
            in_specs=in_specs,
            out_specs=pl.BlockSpec((tb, N, C_pad), lambda b, l: (b, 0, 0)),
            scratch_shapes=[
                pltpu.VMEM((tb * N, H), jnp.float32),   # hidden-state carry across layers
            ],
        ),
        compiler_params=pltpu.CompilerParams(
            # On v7x, CORE_PARALLEL on axis 0 would shard batch blocks across the 2 TCs.
            dimension_semantics=("parallel", "arbitrary"),
            vmem_limit_bytes=vmem_limit,
        ),
    )(*inputs)
    return out_padded[:, :, :C].astype(jnp.float32)


# ----------------------------------------------------------------------------- params
def make_params(key, context_dim, hidden_dim, depth, num_heads, n_patches,
                mlp_ratio=4.0, init_std=0.02):
    dff = int(hidden_dim * mlp_ratio)
    keys = jax.random.split(key, 4 + depth)

    def tn(k, shape, std=init_std):
        return jax.random.truncated_normal(k, -2.0, 2.0, shape, jnp.float32) * std

    p = {
        "w_in": tn(keys[0], (context_dim, hidden_dim)),
        "b_in": jnp.zeros((1, hidden_dim), jnp.float32),
        "tok": tn(keys[1], (1, hidden_dim)),
        "pos": tn(keys[2], (n_patches, hidden_dim)),
        "ln1w": jnp.ones((depth, hidden_dim), jnp.float32),
        "ln1b": jnp.zeros((depth, hidden_dim), jnp.float32),
        "ln2w": jnp.ones((depth, hidden_dim), jnp.float32),
        "ln2b": jnp.zeros((depth, hidden_dim), jnp.float32),
        "bqkv": jnp.zeros((depth, 3 * hidden_dim), jnp.float32),
        "bo": jnp.zeros((depth, hidden_dim), jnp.float32),
        "b1": jnp.zeros((depth, dff), jnp.float32),
        "b2": jnp.zeros((depth, hidden_dim), jnp.float32),
        "lnfw": jnp.ones((1, hidden_dim), jnp.float32),
        "lnfb": jnp.zeros((1, hidden_dim), jnp.float32),
        "wout": tn(keys[3], (hidden_dim, context_dim)),
        "bout": jnp.zeros((1, context_dim), jnp.float32),
    }
    wqkv, wo, w1, w2 = [], [], [], []
    for i in range(depth):
        ki = jax.random.split(keys[4 + i], 4)
        fix_scale = 1.0 / math.sqrt(2.0 * (i + 1))       # fix_init_weight
        wqkv.append(tn(ki[0], (hidden_dim, 3 * hidden_dim)))
        wo.append(tn(ki[1], (hidden_dim, hidden_dim)) * fix_scale)
        w1.append(tn(ki[2], (hidden_dim, dff)))
        w2.append(tn(ki[3], (dff, hidden_dim)) * fix_scale)
    p["wqkv"] = jnp.stack(wqkv)
    p["wo"] = jnp.stack(wo)
    p["w1"] = jnp.stack(w1)
    p["w2"] = jnp.stack(w2)
    return p


# ----------------------------------------------------------------------------- pure-JAX reference
def jepa_predictor_ref(latents, predictor_targets, params, *, depth, num_heads):
    mask = predictor_targets.astype(jnp.float32)[..., None]
    h = latents @ params["w_in"] + params["b_in"]
    h = h + mask * params["tok"]
    h = h + params["pos"]
    B, N, H = h.shape
    hd = H // num_heads
    scale = 1.0 / math.sqrt(hd)

    def ln(x, w, b, eps):
        mu = x.mean(-1, keepdims=True)
        var = ((x - mu) ** 2).mean(-1, keepdims=True)
        return (x - mu) / jnp.sqrt(var + eps) * w + b

    for l in range(depth):
        xn = ln(h, params["ln1w"][l], params["ln1b"][l], 1e-5)
        qkv = xn @ params["wqkv"][l] + params["bqkv"][l]
        q, k, v = jnp.split(qkv, 3, axis=-1)
        qh = q.reshape(B, N, num_heads, hd).transpose(0, 2, 1, 3) * scale
        kh = k.reshape(B, N, num_heads, hd).transpose(0, 2, 1, 3)
        vh = v.reshape(B, N, num_heads, hd).transpose(0, 2, 1, 3)
        s = qh @ kh.transpose(0, 1, 3, 2)
        a = (jax.nn.softmax(s, axis=-1) @ vh).transpose(0, 2, 1, 3).reshape(B, N, H)
        h = h + a @ params["wo"][l] + params["bo"][l]
        xn2 = ln(h, params["ln2w"][l], params["ln2b"][l], 1e-5)
        ff = jax.nn.gelu(xn2 @ params["w1"][l] + params["b1"][l], approximate=False)
        h = h + ff @ params["w2"][l] + params["b2"][l]
    hn = ln(h, params["lnfw"], params["lnfb"], 1e-6)
    return hn @ params["wout"] + params["bout"]


# ----------------------------------------------------------------------------- main
if __name__ == "__main__":
    B, N, C_ENC, HIDDEN = 2, 8, 16, 32
    DEPTH, NUM_HEADS = 2, 4

    root = jax.random.PRNGKey(0)
    k_lat, k_tgt, k_par = jax.random.split(root, 3)

    latents = jax.random.normal(k_lat, (B, N, C_ENC), jnp.float32)
    predictor_targets = jax.random.bernoulli(k_tgt, 0.5, (B, N))
    params = make_params(k_par, C_ENC, HIDDEN, DEPTH, NUM_HEADS, N)

    out = jepa_predictor_forward(latents, predictor_targets, params,
                                 depth=DEPTH, num_heads=NUM_HEADS)
    out = jax.block_until_ready(out)

    ref = jax.block_until_ready(
        jepa_predictor_ref(latents, predictor_targets, params,
                           depth=DEPTH, num_heads=NUM_HEADS)
    )

    assert out.shape == (B, N, C_ENC)
    # bf16 MXU operands, bf16 output store + approx reciprocals vs f32 reference.
    if not jnp.allclose(out, ref, atol=3e-2, rtol=3e-2):
        raise AssertionError(
            f"mismatch vs reference: max abs err = {float(jnp.max(jnp.abs(out - ref)))}"
        )
    print("KERNEL_OK")
</pallas_src>

<mosaic_0001>
module attributes {stable_mosaic.version = 11 : i64} {
  func.func @_jepa_kernel(%arg0: i32, %arg1: i32, %arg2: memref<2x8x16xf32, #tpu.memory_space<vmem>>, %arg3: memref<2x8x1xf32, #tpu.memory_space<vmem>>, %arg4: memref<8x32xf32, #tpu.memory_space<vmem>>, %arg5: memref<16x32xbf16, #tpu.memory_space<vmem>>, %arg6: memref<1x32xf32, #tpu.memory_space<vmem>>, %arg7: memref<1x32xf32, #tpu.memory_space<vmem>>, %arg8: memref<1x1x32xf32, #tpu.memory_space<vmem>>, %arg9: memref<1x1x32xf32, #tpu.memory_space<vmem>>, %arg10: memref<1x32x96xbf16, #tpu.memory_space<vmem>>, %arg11: memref<1x1x96xf32, #tpu.memory_space<vmem>>, %arg12: memref<1x4x8x32xbf16, #tpu.memory_space<vmem>>, %arg13: memref<1x1x32xf32, #tpu.memory_space<vmem>>, %arg14: memref<1x1x32xf32, #tpu.memory_space<vmem>>, %arg15: memref<1x1x32xf32, #tpu.memory_space<vmem>>, %arg16: memref<1x32x128xbf16, #tpu.memory_space<vmem>>, %arg17: memref<1x1x128xf32, #tpu.memory_space<vmem>>, %arg18: memref<1x128x32xbf16, #tpu.memory_space<vmem>>, %arg19: memref<1x1x32xf32, #tpu.memory_space<vmem>>, %arg20: memref<1x32xf32, #tpu.memory_space<vmem>>, %arg21: memref<1x32xf32, #tpu.memory_space<vmem>>, %arg22: memref<32x128xbf16, #tpu.memory_space<vmem>>, %arg23: memref<1x128xf32, #tpu.memory_space<vmem>>, %arg24: memref<2x8x128xbf16, #tpu.memory_space<vmem>>, %arg25: memref<16x32xf32, #tpu.memory_space<vmem>>) attributes {dimension_semantics = [#tpu.dimension_semantics<parallel>, #tpu.dimension_semantics<arbitrary>], iteration_bounds = array<i64: 1, 2>, scalar_prefetch = 0 : i64, scratch_operands = 1 : i64, tpu.core_type = #tpu.core_type<tc>, window_params = [{transform_indices = @transform_0, window_bounds = array<i64: 2, 8, 16>}, {transform_indices = @transform_1, window_bounds = array<i64: 2, 8, 1>}, {pipeline_mode = #tpu.pipeline_mode<synchronous>, transform_indices = @transform_2, window_bounds = array<i64: 8, 32>}, {pipeline_mode = #tpu.pipeline_mode<synchronous>, transform_indices = @transform_3, window_bounds = array<i64: 16, 32>}, {pipeline_mode = #tpu.pipeline_mode<synchronous>, transform_indices = @transform_4, window_bounds = array<i64: 1, 32>}, {pipeline_mode = #tpu.pipeline_mode<synchronous>, transform_indices = @transform_5, window_bounds = array<i64: 1, 32>}, {transform_indices = @transform_6, window_bounds = array<i64: 1, 1, 32>}, {transform_indices = @transform_7, window_bounds = array<i64: 1, 1, 32>}, {transform_indices = @transform_8, window_bounds = array<i64: 1, 32, 96>}, {transform_indices = @transform_9, window_bounds = array<i64: 1, 1, 96>}, {transform_indices = @transform_10, window_bounds = array<i64: 1, 4, 8, 32>}, {transform_indices = @transform_11, window_bounds = array<i64: 1, 1, 32>}, {transform_indices = @transform_12, window_bounds = array<i64: 1, 1, 32>}, {transform_indices = @transform_13, window_bounds = array<i64: 1, 1, 32>}, {transform_indices = @transform_14, window_bounds = array<i64: 1, 32, 128>}, {transform_indices = @transform_15, window_bounds = array<i64: 1, 1, 128>}, {transform_indices = @transform_16, window_bounds = array<i64: 1, 128, 32>}, {transform_indices = @transform_17, window_bounds = array<i64: 1, 1, 32>}, {pipeline_mode = #tpu.pipeline_mode<synchronous>, transform_indices = @transform_18, window_bounds = array<i64: 1, 32>}, {pipeline_mode = #tpu.pipeline_mode<synchronous>, transform_indices = @transform_19, window_bounds = array<i64: 1, 32>}, {pipeline_mode = #tpu.pipeline_mode<synchronous>, transform_indices = @transform_20, window_bounds = array<i64: 32, 128>}, {pipeline_mode = #tpu.pipeline_mode<synchronous>, transform_indices = @transform_21, window_bounds = array<i64: 1, 128>}, {transform_indices = @transform_22, window_bounds = array<i64: 2, 8, 128>}]} {
    %c0_i32 = arith.constant 0 : i32
    %0 = arith.cmpi eq, %arg1, %c0_i32 : i32
    %1 = arith.extui %0 : i1 to i32
    %c0_i32_0 = arith.constant 0 : i32
    %2 = arith.cmpi ne, %1, %c0_i32_0 : i32
    scf.if %2 {
      %c0_100 = arith.constant 0 : index
      %c0_101 = arith.constant 0 : index
      %c0_102 = arith.constant 0 : index
      %230 = vector.load %arg2[%c0_100, %c0_101, %c0_102] : memref<2x8x16xf32, #tpu.memory_space<vmem>>, vector<2x8x16xf32>
      %231 = vector.shape_cast %230 : vector<2x8x16xf32> to vector<16x16xf32>
      %232 = arith.truncf %231 : vector<16x16xf32> to vector<16x16xbf16>
      %c0_103 = arith.constant 0 : index
      %c0_104 = arith.constant 0 : index
      %233 = vector.load %arg5[%c0_103, %c0_104] : memref<16x32xbf16, #tpu.memory_space<vmem>>, vector<16x32xbf16>
      %cst_105 = arith.constant dense<0.000000e+00> : vector<16x32xf32>
      %234 = tpu.matmul %232, %233, %cst_105 {dimension_numbers = #tpu.dot_dimension_numbers<[1], [0], [0], [1], [0, 0, 1, 1], [], []>} : vector<16x16xbf16>, vector<16x32xbf16>, vector<16x32xf32> -> vector<16x32xf32>
      %c0_106 = arith.constant 0 : index
      %c0_107 = arith.constant 0 : index
      %235 = vector.load %arg6[%c0_106, %c0_107] : memref<1x32xf32, #tpu.memory_space<vmem>>, vector<1x32xf32>
      %236 = vector.broadcast %235 : vector<1x32xf32> to vector<16x32xf32>
      %237 = arith.addf %234, %236 : vector<16x32xf32>
      %238 = vector.shape_cast %237 : vector<16x32xf32> to vector<2x8x32xf32>
      %c0_108 = arith.constant 0 : index
      %c0_109 = arith.constant 0 : index
      %c0_110 = arith.constant 0 : index
      %239 = vector.load %arg3[%c0_108, %c0_109, %c0_110] : memref<2x8x1xf32, #tpu.memory_space<vmem>>, vector<2x8x1xf32>
      %c0_111 = arith.constant 0 : index
      %c0_112 = arith.constant 0 : index
      %240 = vector.load %arg7[%c0_111, %c0_112] : memref<1x32xf32, #tpu.memory_space<vmem>>, vector<1x32xf32>
      %241 = vector.shape_cast %240 : vector<1x32xf32> to vector<1x1x32xf32>
      %242 = vector.broadcast %239 : vector<2x8x1xf32> to vector<2x8x32xf32>
      %243 = vector.broadcast %241 : vector<1x1x32xf32> to vector<2x8x32xf32>
      %244 = arith.mulf %242, %243 : vector<2x8x32xf32>
      %245 = arith.addf %238, %244 : vector<2x8x32xf32>
      %c0_113 = arith.constant 0 : index
      %c0_114 = arith.constant 0 : index
      %246 = vector.load %arg4[%c0_113, %c0_114] : memref<8x32xf32, #tpu.memory_space<vmem>>, vector<8x32xf32>
      %247 = vector.shape_cast %246 : vector<8x32xf32> to vector<1x8x32xf32>
      %248 = vector.broadcast %247 : vector<1x8x32xf32> to vector<2x8x32xf32>
      %249 = arith.addf %245, %248 : vector<2x8x32xf32>
      %250 = vector.shape_cast %249 : vector<2x8x32xf32> to vector<16x32xf32>
      %c0_115 = arith.constant 0 : index
      %c0_116 = arith.constant 0 : index
      %251 = vector.load %arg25[%c0_115, %c0_116] : memref<16x32xf32, #tpu.memory_space<vmem>>, vector<16x32xf32>
      tpu.vector_store %arg25[%c0_115, %c0_116], %250 {strides = array<i32>} : memref<16x32xf32, #tpu.memory_space<vmem>>, vector<16x32xf32>,
    } else {
    }
    %c0 = arith.constant 0 : index
    %c0_1 = arith.constant 0 : index
    %3 = vector.load %arg25[%c0, %c0_1] : memref<16x32xf32, #tpu.memory_space<vmem>>, vector<16x32xf32>
    %c0_2 = arith.constant 0 : index
    %c0_3 = arith.constant 0 : index
    %c0_4 = arith.constant 0 : index
    %4 = vector.load %arg8[%c0_2, %c0_3, %c0_4] : memref<1x1x32xf32, #tpu.memory_space<vmem>>, vector<1x1x32xf32>
    %5 = vector.shape_cast %4 : vector<1x1x32xf32> to vector<1x32xf32>
    %c0_5 = arith.constant 0 : index
    %c0_6 = arith.constant 0 : index
    %c0_7 = arith.constant 0 : index
    %6 = vector.load %arg9[%c0_5, %c0_6, %c0_7] : memref<1x1x32xf32, #tpu.memory_space<vmem>>, vector<1x1x32xf32>
    %7 = vector.shape_cast %6 : vector<1x1x32xf32> to vector<1x32xf32>
    %cst = arith.constant dense<0.000000e+00> : vector<16xf32>
    %8 = vector.multi_reduction <add>, %3, %cst [1] : vector<16x32xf32> to vector<16xf32>
    %9 = vector.shape_cast %8 : vector<16xf32> to vector<16x1xf32>
    %cst_8 = arith.constant 3.200000e+01 : f32
    %10 = vector.broadcast %cst_8 : f32 to vector<16x1xf32>
    %11 = arith.divf %9, %10 : vector<16x1xf32>
    %12 = vector.broadcast %11 : vector<16x1xf32> to vector<16x32xf32>
    %13 = arith.subf %3, %12 : vector<16x32xf32>
    %14 = arith.mulf %13, %13 : vector<16x32xf32>
    %cst_9 = arith.constant dense<0.000000e+00> : vector<16xf32>
    %15 = vector.multi_reduction <add>, %14, %cst_9 [1] : vector<16x32xf32> to vector<16xf32>
    %16 = vector.shape_cast %15 : vector<16xf32> to vector<16x1xf32>
    %cst_10 = arith.constant 3.200000e+01 : f32
    %17 = vector.broadcast %cst_10 : f32 to vector<16x1xf32>
    %18 = arith.divf %16, %17 : vector<16x1xf32>
    %19 = vector.broadcast %11 : vector<16x1xf32> to vector<16x32xf32>
    %20 = arith.subf %3, %19 : vector<16x32xf32>
    %cst_11 = arith.constant 9.99999974E-6 : f32
    %21 = vector.broadcast %cst_11 : f32 to vector<16x1xf32>
    %22 = arith.addf %18, %21 : vector<16x1xf32>
    %23 = math.rsqrt %22 : vector<16x1xf32>
    %24 = vector.broadcast %23 : vector<16x1xf32> to vector<16x32xf32>
    %25 = arith.mulf %20, %24 : vector<16x32xf32>
    %26 = vector.broadcast %5 : vector<1x32xf32> to vector<16x32xf32>
    %27 = arith.mulf %25, %26 : vector<16x32xf32>
    %28 = vector.broadcast %7 : vector<1x32xf32> to vector<16x32xf32>
    %29 = arith.addf %27, %28 : vector<16x32xf32>
    %30 = arith.truncf %29 : vector<16x32xf32> to vector<16x32xbf16>
    %c0_12 = arith.constant 0 : index
    %c0_13 = arith.constant 0 : index
    %c0_14 = arith.constant 0 : index
    %31 = vector.load %arg10[%c0_12, %c0_13, %c0_14] : memref<1x32x96xbf16, #tpu.memory_space<vmem>>, vector<1x32x96xbf16>
    %32 = vector.shape_cast %31 : vector<1x32x96xbf16> to vector<32x96xbf16>
    %cst_15 = arith.constant dense<0.000000e+00> : vector<16x96xf32>
    %33 = tpu.matmul %30, %32, %cst_15 {dimension_numbers = #tpu.dot_dimension_numbers<[1], [0], [0], [1], [0, 0, 1, 1], [], []>} : vector<16x32xbf16>, vector<32x96xbf16>, vector<16x96xf32> -> vector<16x96xf32>
    %c0_16 = arith.constant 0 : index
    %c0_17 = arith.constant 0 : index
    %c0_18 = arith.constant 0 : index
    %34 = vector.load %arg11[%c0_16, %c0_17, %c0_18] : memref<1x1x96xf32, #tpu.memory_space<vmem>>, vector<1x1x96xf32>
    %35 = vector.shape_cast %34 : vector<1x1x96xf32> to vector<1x96xf32>
    %36 = vector.broadcast %35 : vector<1x96xf32> to vector<16x96xf32>
    %37 = arith.addf %33, %36 : vector<16x96xf32>
    %38 = vector.extract_strided_slice %37 {offsets = [0, 0], sizes = [16, 32], strides = [1, 1]} : vector<16x96xf32> to vector<16x32xf32>
    %cst_19 = arith.constant 0.353553385 : f32
    %39 = vector.broadcast %cst_19 : f32 to vector<16x32xf32>
    %40 = arith.mulf %38, %39 : vector<16x32xf32>
    %41 = arith.truncf %40 : vector<16x32xf32> to vector<16x32xbf16>
    %42 = vector.shape_cast %41 : vector<16x32xbf16> to vector<2x8x32xbf16>
    %43 = vector.extract_strided_slice %37 {offsets = [0, 32], sizes = [16, 32], strides = [1, 1]} : vector<16x96xf32> to vector<16x32xf32>
    %44 = arith.truncf %43 : vector<16x32xf32> to vector<16x32xbf16>
    %45 = vector.shape_cast %44 : vector<16x32xbf16> to vector<2x8x32xbf16>
    %46 = vector.extract_strided_slice %37 {offsets = [0, 64], sizes = [16, 32], strides = [1, 1]} : vector<16x96xf32> to vector<16x32xf32>
    %47 = arith.truncf %46 : vector<16x32xf32> to vector<16x32xbf16>
    %48 = vector.shape_cast %47 : vector<16x32xbf16> to vector<2x8x32xbf16>
    %cst_20 = arith.constant 0.000000e+00 : f32
    %49 = vector.broadcast %cst_20 : f32 to vector<16x32xf32>
    %50 = vector.extract_strided_slice %42 {offsets = [0, 0, 0], sizes = [2, 8, 8], strides = [1, 1, 1]} : vector<2x8x32xbf16> to vector<2x8x8xbf16>
    %51 = vector.extract_strided_slice %45 {offsets = [0, 0, 0], sizes = [2, 8, 8], strides = [1, 1, 1]} : vector<2x8x32xbf16> to vector<2x8x8xbf16>
    "tpu.trace_start"() <{level = 10 : i32, message = "bqd,bkd->bqk"}> : () -> ()
    %cst_21 = arith.constant dense<0.000000e+00> : vector<2x8x8xf32>
    %52 = tpu.matmul %50, %51, %cst_21 {dimension_numbers = #tpu.dot_dimension_numbers<[2], [2], [1], [1], [0, 0, 0, 1, 1, 1], [0], [0]>} : vector<2x8x8xbf16>, vector<2x8x8xbf16>, vector<2x8x8xf32> -> vector<2x8x8xf32>
    "tpu.trace_stop"() : () -> ()
    %cst_22 = arith.constant dense<0xFF800000> : vector<2x8xf32>
    %53 = vector.multi_reduction <maximumf>, %52, %cst_22 [2] : vector<2x8x8xf32> to vector<2x8xf32>
    %54 = vector.shape_cast %53 : vector<2x8xf32> to vector<2x8x1xf32>
    %55 = vector.broadcast %54 : vector<2x8x1xf32> to vector<2x8x8xf32>
    %56 = arith.subf %52, %55 : vector<2x8x8xf32>
    %57 = math.exp %56 : vector<2x8x8xf32>
    %cst_23 = arith.constant dense<0.000000e+00> : vector<2x8xf32>
    %58 = vector.multi_reduction <add>, %57, %cst_23 [2] : vector<2x8x8xf32> to vector<2x8xf32>
    %59 = vector.shape_cast %58 : vector<2x8xf32> to vector<2x8x1xf32>
    %60 = tpu.reciprocal %59 {approx = true} : vector<2x8x1xf32> -> vector<2x8x1xf32>
    %61 = vector.broadcast %60 : vector<2x8x1xf32> to vector<2x8x8xf32>
    %62 = arith.mulf %57, %61 : vector<2x8x8xf32>
    %63 = arith.truncf %62 : vector<2x8x8xf32> to vector<2x8x8xbf16>
    %64 = vector.extract_strided_slice %48 {offsets = [0, 0, 0], sizes = [2, 8, 8], strides = [1, 1, 1]} : vector<2x8x32xbf16> to vector<2x8x8xbf16>
    "tpu.trace_start"() <{level = 10 : i32, message = "bqk,bkd->bqd"}> : () -> ()
    %cst_24 = arith.constant dense<0.000000e+00> : vector<2x8x8xf32>
    %65 = tpu.matmul %63, %64, %cst_24 {dimension_numbers = #tpu.dot_dimension_numbers<[2], [1], [1], [2], [0, 0, 0, 1, 1, 2], [0], [0]>} : vector<2x8x8xbf16>, vector<2x8x8xbf16>, vector<2x8x8xf32> -> vector<2x8x8xf32>
    "tpu.trace_stop"() : () -> ()
    %66 = vector.shape_cast %65 : vector<2x8x8xf32> to vector<16x8xf32>
    %67 = arith.truncf %66 : vector<16x8xf32> to vector<16x8xbf16>
    %c0_25 = arith.constant 0 : index
    %c0_26 = arith.constant 0 : index
    %c0_27 = arith.constant 0 : index
    %c0_28 = arith.constant 0 : index
    %68 = vector.load %arg12[%c0_25, %c0_26, %c0_27, %c0_28] : memref<1x4x8x32xbf16, #tpu.memory_space<vmem>>, vector<1x1x8x32xbf16>
    %69 = vector.shape_cast %68 : vector<1x1x8x32xbf16> to vector<8x32xbf16>
    %cst_29 = arith.constant dense<0.000000e+00> : vector<16x32xf32>
    %70 = tpu.matmul %67, %69, %cst_29 {dimension_numbers = #tpu.dot_dimension_numbers<[1], [0], [0], [1], [0, 0, 1, 1], [], []>} : vector<16x8xbf16>, vector<8x32xbf16>, vector<16x32xf32> -> vector<16x32xf32>
    %71 = arith.addf %49, %70 : vector<16x32xf32>
    %72 = vector.extract_strided_slice %42 {offsets = [0, 0, 8], sizes = [2, 8, 8], strides = [1, 1, 1]} : vector<2x8x32xbf16> to vector<2x8x8xbf16>
    %73 = vector.extract_strided_slice %45 {offsets = [0, 0, 8], sizes = [2, 8, 8], strides = [1, 1, 1]} : vector<2x8x32xbf16> to vector<2x8x8xbf16>
    "tpu.trace_start"() <{level = 10 : i32, message = "bqd,bkd->bqk"}> : () -> ()
    %cst_30 = arith.constant dense<0.000000e+00> : vector<2x8x8xf32>
    %74 = tpu.matmul %72, %73, %cst_30 {dimension_numbers = #tpu.dot_dimension_numbers<[2], [2], [1], [1], [0, 0, 0, 1, 1, 1], [0], [0]>} : vector<2x8x8xbf16>, vector<2x8x8xbf16>, vector<2x8x8xf32> -> vector<2x8x8xf32>
    "tpu.trace_stop"() : () -> ()
    %cst_31 = arith.constant dense<0xFF800000> : vector<2x8xf32>
    %75 = vector.multi_reduction <maximumf>, %74, %cst_31 [2] : vector<2x8x8xf32> to vector<2x8xf32>
    %76 = vector.shape_cast %75 : vector<2x8xf32> to vector<2x8x1xf32>
    %77 = vector.broadcast %76 : vector<2x8x1xf32> to vector<2x8x8xf32>
    %78 = arith.subf %74, %77 : vector<2x8x8xf32>
    %79 = math.exp %78 : vector<2x8x8xf32>
    %cst_32 = arith.constant dense<0.000000e+00> : vector<2x8xf32>
    %80 = vector.multi_reduction <add>, %79, %cst_32 [2] : vector<2x8x8xf32> to vector<2x8xf32>
    %81 = vector.shape_cast %80 : vector<2x8xf32> to vector<2x8x1xf32>
    %82 = tpu.reciprocal %81 {approx = true} : vector<2x8x1xf32> -> vector<2x8x1xf32>
    %83 = vector.broadcast %82 : vector<2x8x1xf32> to vector<2x8x8xf32>
    %84 = arith.mulf %79, %83 : vector<2x8x8xf32>
    %85 = arith.truncf %84 : vector<2x8x8xf32> to vector<2x8x8xbf16>
    %86 = vector.extract_strided_slice %48 {offsets = [0, 0, 8], sizes = [2, 8, 8], strides = [1, 1, 1]} : vector<2x8x32xbf16> to vector<2x8x8xbf16>
    "tpu.trace_start"() <{level = 10 : i32, message = "bqk,bkd->bqd"}> : () -> ()
    %cst_33 = arith.constant dense<0.000000e+00> : vector<2x8x8xf32>
    %87 = tpu.matmul %85, %86, %cst_33 {dimension_numbers = #tpu.dot_dimension_numbers<[2], [1], [1], [2], [0, 0, 0, 1, 1, 2], [0], [0]>} : vector<2x8x8xbf16>, vector<2x8x8xbf16>, vector<2x8x8xf32> -> vector<2x8x8xf32>
    "tpu.trace_stop"() : () -> ()
    %88 = vector.shape_cast %87 : vector<2x8x8xf32> to vector<16x8xf32>
    %89 = arith.truncf %88 : vector<16x8xf32> to vector<16x8xbf16>
    %c0_34 = arith.constant 0 : index
    %c1 = arith.constant 1 : index
    %c0_35 = arith.constant 0 : index
    %c0_36 = arith.constant 0 : index
    %90 = vector.load %arg12[%c0_34, %c1, %c0_35, %c0_36] : memref<1x4x8x32xbf16, #tpu.memory_space<vmem>>, vector<1x1x8x32xbf16>
    %91 = vector.shape_cast %90 : vector<1x1x8x32xbf16> to vector<8x32xbf16>
    %cst_37 = arith.constant dense<0.000000e+00> : vector<16x32xf32>
    %92 = tpu.matmul %89, %91, %cst_37 {dimension_numbers = #tpu.dot_dimension_numbers<[1], [0], [0], [1], [0, 0, 1, 1], [], []>} : vector<16x8xbf16>, vector<8x32xbf16>, vector<16x32xf32> -> vector<16x32xf32>
    %93 = arith.addf %71, %92 : vector<16x32xf32>
    %94 = vector.extract_strided_slice %42 {offsets = [0, 0, 16], sizes = [2, 8, 8], strides = [1, 1, 1]} : vector<2x8x32xbf16> to vector<2x8x8xbf16>
    %95 = vector.extract_strided_slice %45 {offsets = [0, 0, 16], sizes = [2, 8, 8], strides = [1, 1, 1]} : vector<2x8x32xbf16> to vector<2x8x8xbf16>
    "tpu.trace_start"() <{level = 10 : i32, message = "bqd,bkd->bqk"}> : () -> ()
    %cst_38 = arith.constant dense<0.000000e+00> : vector<2x8x8xf32>
    %96 = tpu.matmul %94, %95, %cst_38 {dimension_numbers = #tpu.dot_dimension_numbers<[2], [2], [1], [1], [0, 0, 0, 1, 1, 1], [0], [0]>} : vector<2x8x8xbf16>, vector<2x8x8xbf16>, vector<2x8x8xf32> -> vector<2x8x8xf32>
    "tpu.trace_stop"() : () -> ()
    %cst_39 = arith.constant dense<0xFF800000> : vector<2x8xf32>
    %97 = vector.multi_reduction <maximumf>, %96, %cst_39 [2] : vector<2x8x8xf32> to vector<2x8xf32>
    %98 = vector.shape_cast %97 : vector<2x8xf32> to vector<2x8x1xf32>
    %99 = vector.broadcast %98 : vector<2x8x1xf32> to vector<2x8x8xf32>
    %100 = arith.subf %96, %99 : vector<2x8x8xf32>
    %101 = math.exp %100 : vector<2x8x8xf32>
    %cst_40 = arith.constant dense<0.000000e+00> : vector<2x8xf32>
    %102 = vector.multi_reduction <add>, %101, %cst_40 [2] : vector<2x8x8xf32> to vector<2x8xf32>
    %103 = vector.shape_cast %102 : vector<2x8xf32> to vector<2x8x1xf32>
    %104 = tpu.reciprocal %103 {approx = true} : vector<2x8x1xf32> -> vector<2x8x1xf32>
    %105 = vector.broadcast %104 : vector<2x8x1xf32> to vector<2x8x8xf32>
    %106 = arith.mulf %101, %105 : vector<2x8x8xf32>
    %107 = arith.truncf %106 : vector<2x8x8xf32> to vector<2x8x8xbf16>
    %108 = vector.extract_strided_slice %48 {offsets = [0, 0, 16], sizes = [2, 8, 8], strides = [1, 1, 1]} : vector<2x8x32xbf16> to vector<2x8x8xbf16>
    "tpu.trace_start"() <{level = 10 : i32, message = "bqk,bkd->bqd"}> : () -> ()
    %cst_41 = arith.constant dense<0.000000e+00> : vector<2x8x8xf32>
    %109 = tpu.matmul %107, %108, %cst_41 {dimension_numbers = #tpu.dot_dimension_numbers<[2], [1], [1], [2], [0, 0, 0, 1, 1, 2], [0], [0]>} : vector<2x8x8xbf16>, vector<2x8x8xbf16>, vector<2x8x8xf32> -> vector<2x8x8xf32>
    "tpu.trace_stop"() : () -> ()
    %110 = vector.shape_cast %109 : vector<2x8x8xf32> to vector<16x8xf32>
    %111 = arith.truncf %110 : vector<16x8xf32> to vector<16x8xbf16>
    %c0_42 = arith.constant 0 : index
    %c2 = arith.constant 2 : index
    %c0_43 = arith.constant 0 : index
    %c0_44 = arith.constant 0 : index
    %112 = vector.load %arg12[%c0_42, %c2, %c0_43, %c0_44] : memref<1x4x8x32xbf16, #tpu.memory_space<vmem>>, vector<1x1x8x32xbf16>
    %113 = vector.shape_cast %112 : vector<1x1x8x32xbf16> to vector<8x32xbf16>
    %cst_45 = arith.constant dense<0.000000e+00> : vector<16x32xf32>
    %114 = tpu.matmul %111, %113, %cst_45 {dimension_numbers = #tpu.dot_dimension_numbers<[1], [0], [0], [1], [0, 0, 1, 1], [], []>} : vector<16x8xbf16>, vector<8x32xbf16>, vector<16x32xf32> -> vector<16x32xf32>
    %115 = arith.addf %93, %114 : vector<16x32xf32>
    %116 = vector.extract_strided_slice %42 {offsets = [0, 0, 24], sizes = [2, 8, 8], strides = [1, 1, 1]} : vector<2x8x32xbf16> to vector<2x8x8xbf16>
    %117 = vector.extract_strided_slice %45 {offsets = [0, 0, 24], sizes = [2, 8, 8], strides = [1, 1, 1]} : vector<2x8x32xbf16> to vector<2x8x8xbf16>
    "tpu.trace_start"() <{level = 10 : i32, message = "bqd,bkd->bqk"}> : () -> ()
    %cst_46 = arith.constant dense<0.000000e+00> : vector<2x8x8xf32>
    %118 = tpu.matmul %116, %117, %cst_46 {dimension_numbers = #tpu.dot_dimension_numbers<[2], [2], [1], [1], [0, 0, 0, 1, 1, 1], [0], [0]>} : vector<2x8x8xbf16>, vector<2x8x8xbf16>, vector<2x8x8xf32> -> vector<2x8x8xf32>
    "tpu.trace_stop"() : () -> ()
    %cst_47 = arith.constant dense<0xFF800000> : vector<2x8xf32>
    %119 = vector.multi_reduction <maximumf>, %118, %cst_47 [2] : vector<2x8x8xf32> to vector<2x8xf32>
    %120 = vector.shape_cast %119 : vector<2x8xf32> to vector<2x8x1xf32>
    %121 = vector.broadcast %120 : vector<2x8x1xf32> to vector<2x8x8xf32>
    %122 = arith.subf %118, %121 : vector<2x8x8xf32>
    %123 = math.exp %122 : vector<2x8x8xf32>
    %cst_48 = arith.constant dense<0.000000e+00> : vector<2x8xf32>
    %124 = vector.multi_reduction <add>, %123, %cst_48 [2] : vector<2x8x8xf32> to vector<2x8xf32>
    %125 = vector.shape_cast %124 : vector<2x8xf32> to vector<2x8x1xf32>
    %126 = tpu.reciprocal %125 {approx = true} : vector<2x8x1xf32> -> vector<2x8x1xf32>
    %127 = vector.broadcast %126 : vector<2x8x1xf32> to vector<2x8x8xf32>
    %128 = arith.mulf %123, %127 : vector<2x8x8xf32>
    %129 = arith.truncf %128 : vector<2x8x8xf32> to vector<2x8x8xbf16>
    %130 = vector.extract_strided_slice %48 {offsets = [0, 0, 24], sizes = [2, 8, 8], strides = [1, 1, 1]} : vector<2x8x32xbf16> to vector<2x8x8xbf16>
    "tpu.trace_start"() <{level = 10 : i32, message = "bqk,bkd->bqd"}> : () -> ()
    %cst_49 = arith.constant dense<0.000000e+00> : vector<2x8x8xf32>
    %131 = tpu.matmul %129, %130, %cst_49 {dimension_numbers = #tpu.dot_dimension_numbers<[2], [1], [1], [2], [0, 0, 0, 1, 1, 2], [0], [0]>} : vector<2x8x8xbf16>, vector<2x8x8xbf16>, vector<2x8x8xf32> -> vector<2x8x8xf32>
    "tpu.trace_stop"() : () -> ()
    %132 = vector.shape_cast %131 : vector<2x8x8xf32> to vector<16x8xf32>
    %133 = arith.truncf %132 : vector<16x8xf32> to vector<16x8xbf16>
    %c0_50 = arith.constant 0 : index
    %c3 = arith.constant 3 : index
    %c0_51 = arith.constant 0 : index
    %c0_52 = arith.constant 0 : index
    %134 = vector.load %arg12[%c0_50, %c3, %c0_51, %c0_52] : memref<1x4x8x32xbf16, #tpu.memory_space<vmem>>, vector<1x1x8x32xbf16>
    %135 = vector.shape_cast %134 : vector<1x1x8x32xbf16> to vector<8x32xbf16>
    %cst_53 = arith.constant dense<0.000000e+00> : vector<16x32xf32>
    %136 = tpu.matmul %133, %135, %cst_53 {dimension_numbers = #tpu.dot_dimension_numbers<[1], [0], [0], [1], [0, 0, 1, 1], [], []>} : vector<16x8xbf16>, vector<8x32xbf16>, vector<16x32xf32> -> vector<16x32xf32>
    %137 = arith.addf %115, %136 : vector<16x32xf32>
    %138 = arith.addf %3, %137 : vector<16x32xf32>
    %c0_54 = arith.constant 0 : index
    %c0_55 = arith.constant 0 : index
    %c0_56 = arith.constant 0 : index
    %139 = vector.load %arg13[%c0_54, %c0_55, %c0_56] : memref<1x1x32xf32, #tpu.memory_space<vmem>>, vector<1x1x32xf32>
    %140 = vector.shape_cast %139 : vector<1x1x32xf32> to vector<1x32xf32>
    %141 = vector.broadcast %140 : vector<1x32xf32> to vector<16x32xf32>
    %142 = arith.addf %138, %141 : vector<16x32xf32>
    %c0_57 = arith.constant 0 : index
    %c0_58 = arith.constant 0 : index
    %c0_59 = arith.constant 0 : index
    %143 = vector.load %arg14[%c0_57, %c0_58, %c0_59] : memref<1x1x32xf32, #tpu.memory_space<vmem>>, vector<1x1x32xf32>
    %144 = vector.shape_cast %143 : vector<1x1x32xf32> to vector<1x32xf32>
    %c0_60 = arith.constant 0 : index
    %c0_61 = arith.constant 0 : index
    %c0_62 = arith.constant 0 : index
    %145 = vector.load %arg15[%c0_60, %c0_61, %c0_62] : memref<1x1x32xf32, #tpu.memory_space<vmem>>, vector<1x1x32xf32>
    %146 = vector.shape_cast %145 : vector<1x1x32xf32> to vector<1x32xf32>
    %cst_63 = arith.constant dense<0.000000e+00> : vector<16xf32>
    %147 = vector.multi_reduction <add>, %142, %cst_63 [1] : vector<16x32xf32> to vector<16xf32>
    %148 = vector.shape_cast %147 : vector<16xf32> to vector<16x1xf32>
    %cst_64 = arith.constant 3.200000e+01 : f32
    %149 = vector.broadcast %cst_64 : f32 to vector<16x1xf32>
    %150 = arith.divf %148, %149 : vector<16x1xf32>
    %151 = vector.broadcast %150 : vector<16x1xf32> to vector<16x32xf32>
    %152 = arith.subf %142, %151 : vector<16x32xf32>
    %153 = arith.mulf %152, %152 : vector<16x32xf32>
    %cst_65 = arith.constant dense<0.000000e+00> : vector<16xf32>
    %154 = vector.multi_reduction <add>, %153, %cst_65 [1] : vector<16x32xf32> to vector<16xf32>
    %155 = vector.shape_cast %154 : vector<16xf32> to vector<16x1xf32>
    %cst_66 = arith.constant 3.200000e+01 : f32
    %156 = vector.broadcast %cst_66 : f32 to vector<16x1xf32>
    %157 = arith.divf %155, %156 : vector<16x1xf32>
    %158 = vector.broadcast %150 : vector<16x1xf32> to vector<16x32xf32>
    %159 = arith.subf %142, %158 : vector<16x32xf32>
    %cst_67 = arith.constant 9.99999974E-6 : f32
    %160 = vector.broadcast %cst_67 : f32 to vector<16x1xf32>
    %161 = arith.addf %157, %160 : vector<16x1xf32>
    %162 = math.rsqrt %161 : vector<16x1xf32>
    %163 = vector.broadcast %162 : vector<16x1xf32> to vector<16x32xf32>
    %164 = arith.mulf %159, %163 : vector<16x32xf32>
    %165 = vector.broadcast %144 : vector<1x32xf32> to vector<16x32xf32>
    %166 = arith.mulf %164, %165 : vector<16x32xf32>
    %167 = vector.broadcast %146 : vector<1x32xf32> to vector<16x32xf32>
    %168 = arith.addf %166, %167 : vector<16x32xf32>
    %169 = arith.truncf %168 : vector<16x32xf32> to vector<16x32xbf16>
    %c0_68 = arith.constant 0 : index
    %c0_69 = arith.constant 0 : index
    %c0_70 = arith.constant 0 : index
    %170 = vector.load %arg16[%c0_68, %c0_69, %c0_70] : memref<1x32x128xbf16, #tpu.memory_space<vmem>>, vector<1x32x128xbf16>
    %171 = vector.shape_cast %170 : vector<1x32x128xbf16> to vector<32x128xbf16>
    %cst_71 = arith.constant dense<0.000000e+00> : vector<16x128xf32>
    %172 = tpu.matmul %169, %171, %cst_71 {dimension_numbers = #tpu.dot_dimension_numbers<[1], [0], [0], [1], [0, 0, 1, 1], [], []>} : vector<16x32xbf16>, vector<32x128xbf16>, vector<16x128xf32> -> vector<16x128xf32>
    %c0_72 = arith.constant 0 : index
    %c0_73 = arith.constant 0 : index
    %c0_74 = arith.constant 0 : index
    %173 = vector.load %arg17[%c0_72, %c0_73, %c0_74] : memref<1x1x128xf32, #tpu.memory_space<vmem>>, vector<1x1x128xf32>
    %174 = vector.shape_cast %173 : vector<1x1x128xf32> to vector<1x128xf32>
    %175 = vector.broadcast %174 : vector<1x128xf32> to vector<16x128xf32>
    %176 = arith.addf %172, %175 : vector<16x128xf32>
    %cst_75 = arith.constant 5.000000e-01 : f32
    %177 = vector.broadcast %cst_75 : f32 to vector<16x128xf32>
    %178 = arith.mulf %177, %176 : vector<16x128xf32>
    %cst_76 = arith.constant 0.707106769 : f32
    %179 = vector.broadcast %cst_76 : f32 to vector<16x128xf32>
    %180 = arith.mulf %176, %179 : vector<16x128xf32>
    %cst_77 = arith.constant 0.000000e+00 : f32
    %181 = vector.broadcast %cst_77 : f32 to vector<16x128xf32>
    %182 = arith.cmpf oge, %180, %181 : vector<16x128xf32>
    %cst_78 = arith.constant 1.000000e+00 : f32
    %cst_79 = arith.constant -1.000000e+00 : f32
    %183 = vector.broadcast %cst_78 : f32 to vector<16x128xf32>
    %184 = vector.broadcast %cst_79 : f32 to vector<16x128xf32>
    %185 = arith.select %182, %183, %184 : vector<16x128xi1>, vector<16x128xf32>
    %186 = math.absf %180 : vector<16x128xf32>
    %cst_80 = arith.constant 0.327591091 : f32
    %187 = vector.broadcast %cst_80 : f32 to vector<16x128xf32>
    %188 = arith.mulf %187, %186 : vector<16x128xf32>
    %cst_81 = arith.constant 1.000000e+00 : f32
    %189 = vector.broadcast %cst_81 : f32 to vector<16x128xf32>
    %190 = arith.addf %189, %188 : vector<16x128xf32>
    %191 = tpu.reciprocal %190 {approx = true} : vector<16x128xf32> -> vector<16x128xf32>
    %cst_82 = arith.constant 1.06140542 : f32
    %192 = vector.broadcast %cst_82 : f32 to vector<16x128xf32>
    %193 = arith.mulf %192, %191 : vector<16x128xf32>
    %cst_83 = arith.constant -1.45315206 : f32
    %194 = vector.broadcast %cst_83 : f32 to vector<16x128xf32>
    %195 = arith.addf %193, %194 : vector<16x128xf32>
    %196 = arith.mulf %195, %191 : vector<16x128xf32>
    %cst_84 = arith.constant 1.42141378 : f32
    %197 = vector.broadcast %cst_84 : f32 to vector<16x128xf32>
    %198 = arith.addf %196, %197 : vector<16x128xf32>
    %199 = arith.mulf %198, %191 : vector<16x128xf32>
    %cst_85 = arith.constant -0.284496725 : f32
    %200 = vector.broadcast %cst_85 : f32 to vector<16x128xf32>
    %201 = arith.addf %199, %200 : vector<16x128xf32>
    %202 = arith.mulf %201, %191 : vector<16x128xf32>
    %cst_86 = arith.constant 0.254829586 : f32
    %203 = vector.broadcast %cst_86 : f32 to vector<16x128xf32>
    %204 = arith.addf %202, %203 : vector<16x128xf32>
    %205 = arith.mulf %204, %191 : vector<16x128xf32>
    %cst_87 = arith.constant 0.000000e+00 : f32
    %206 = vector.broadcast %cst_87 : f32 to vector<16x128xf32>
    %207 = arith.subf %206, %186 : vector<16x128xf32>
    %208 = arith.mulf %207, %186 : vector<16x128xf32>
    %209 = math.exp %208 : vector<16x128xf32>
    %210 = arith.mulf %205, %209 : vector<16x128xf32>
    %cst_88 = arith.constant 1.000000e+00 : f32
    %211 = vector.broadcast %cst_88 : f32 to vector<16x128xf32>
    %212 = arith.subf %211, %210 : vector<16x128xf32>
    %213 = arith.mulf %185, %212 : vector<16x128xf32>
    %cst_89 = arith.constant 1.000000e+00 : f32
    %214 = vector.broadcast %cst_89 : f32 to vector<16x128xf32>
    %215 = arith.addf %214, %213 : vector<16x128xf32>
    %216 = arith.mulf %178, %215 : vector<16x128xf32>
    %217 = arith.truncf %216 : vector<16x128xf32> to vector<16x128xbf16>
    %c0_90 = arith.constant 0 : index
    %c0_91 = arith.constant 0 : index
    %c0_92 = arith.constant 0 : index
    %218 = vector.load %arg18[%c0_90, %c0_91, %c0_92] : memref<1x128x32xbf16, #tpu.memory_space<vmem>>, vector<1x128x32xbf16>
    %219 = vector.shape_cast %218 : vector<1x128x32xbf16> to vector<128x32xbf16>
    %cst_93 = arith.constant dense<0.000000e+00> : vector<16x32xf32>
    %220 = tpu.matmul %217, %219, %cst_93 {dimension_numbers = #tpu.dot_dimension_numbers<[1], [0], [0], [1], [0, 0, 1, 1], [], []>} : vector<16x128xbf16>, vector<128x32xbf16>, vector<16x32xf32> -> vector<16x32xf32>
    %c0_94 = arith.constant 0 : index
    %c0_95 = arith.constant 0 : index
    %c0_96 = arith.constant 0 : index
    %221 = vector.load %arg19[%c0_94, %c0_95, %c0_96] : memref<1x1x32xf32, #tpu.memory_space<vmem>>, vector<1x1x32xf32>
    %222 = vector.shape_cast %221 : vector<1x1x32xf32> to vector<1x32xf32>
    %223 = vector.broadcast %222 : vector<1x32xf32> to vector<16x32xf32>
    %224 = arith.addf %220, %223 : vector<16x32xf32>
    %225 = arith.addf %142, %224 : vector<16x32xf32>
    %c0_97 = arith.constant 0 : index
    %c0_98 = arith.constant 0 : index
    %226 = vector.load %arg25[%c0_97, %c0_98] : memref<16x32xf32, #tpu.memory_space<vmem>>, vector<16x32xf32>
    tpu.vector_store %arg25[%c0_97, %c0_98], %225 {strides = array<i32>} : memref<16x32xf32, #tpu.memory_space<vmem>>, vector<16x32xf32>,
    %c1_i32 = arith.constant 1 : i32
    %227 = arith.cmpi eq, %arg1, %c1_i32 : i32
    %228 = arith.extui %227 : i1 to i32
    %c0_i32_99 = arith.constant 0 : i32
    %229 = arith.cmpi ne, %228, %c0_i32_99 : i32
    scf.if %229 {
      %c0_100 = arith.constant 0 : index
      %c0_101 = arith.constant 0 : index
      %230 = vector.load %arg25[%c0_100, %c0_101] : memref<16x32xf32, #tpu.memory_space<vmem>>, vector<16x32xf32>
      %c0_102 = arith.constant 0 : index
      %c0_103 = arith.constant 0 : index
      %231 = vector.load %arg20[%c0_102, %c0_103] : memref<1x32xf32, #tpu.memory_space<vmem>>, vector<1x32xf32>
      %c0_104 = arith.constant 0 : index
      %c0_105 = arith.constant 0 : index
      %232 = vector.load %arg21[%c0_104, %c0_105] : memref<1x32xf32, #tpu.memory_space<vmem>>, vector<1x32xf32>
      %cst_106 = arith.constant dense<0.000000e+00> : vector<16xf32>
      %233 = vector.multi_reduction <add>, %230, %cst_106 [1] : vector<16x32xf32> to vector<16xf32>
      %234 = vector.shape_cast %233 : vector<16xf32> to vector<16x1xf32>
      %cst_107 = arith.constant 3.200000e+01 : f32
      %235 = vector.broadcast %cst_107 : f32 to vector<16x1xf32>
      %236 = arith.divf %234, %235 : vector<16x1xf32>
      %237 = vector.broadcast %236 : vector<16x1xf32> to vector<16x32xf32>
      %238 = arith.subf %230, %237 : vector<16x32xf32>
      %239 = arith.mulf %238, %238 : vector<16x32xf32>
      %cst_108 = arith.constant dense<0.000000e+00> : vector<16xf32>
      %240 = vector.multi_reduction <add>, %239, %cst_108 [1] : vector<16x32xf32> to vector<16xf32>
      %241 = vector.shape_cast %240 : vector<16xf32> to vector<16x1xf32>
      %cst_109 = arith.constant 3.200000e+01 : f32
      %242 = vector.broadcast %cst_109 : f32 to vector<16x1xf32>
      %243 = arith.divf %241, %242 : vector<16x1xf32>
      %244 = vector.broadcast %236 : vector<16x1xf32> to vector<16x32xf32>
      %245 = arith.subf %230, %244 : vector<16x32xf32>
      %cst_110 = arith.constant 9.99999997E-7 : f32
      %246 = vector.broadcast %cst_110 : f32 to vector<16x1xf32>
      %247 = arith.addf %243, %246 : vector<16x1xf32>
      %248 = math.rsqrt %247 : vector<16x1xf32>
      %249 = vector.broadcast %248 : vector<16x1xf32> to vector<16x32xf32>
      %250 = arith.mulf %245, %249 : vector<16x32xf32>
      %251 = vector.broadcast %231 : vector<1x32xf32> to vector<16x32xf32>
      %252 = arith.mulf %250, %251 : vector<16x32xf32>
      %253 = vector.broadcast %232 : vector<1x32xf32> to vector<16x32xf32>
      %254 = arith.addf %252, %253 : vector<16x32xf32>
      %255 = arith.truncf %254 : vector<16x32xf32> to vector<16x32xbf16>
      %c0_111 = arith.constant 0 : index
      %c0_112 = arith.constant 0 : index
      %256 = vector.load %arg22[%c0_111, %c0_112] : memref<32x128xbf16, #tpu.memory_space<vmem>>, vector<32x128xbf16>
      %cst_113 = arith.constant dense<0.000000e+00> : vector<16x128xf32>
      %257 = tpu.matmul %255, %256, %cst_113 {dimension_numbers = #tpu.dot_dimension_numbers<[1], [0], [0], [1], [0, 0, 1, 1], [], []>} : vector<16x32xbf16>, vector<32x128xbf16>, vector<16x128xf32> -> vector<16x128xf32>
      %c0_114 = arith.constant 0 : index
      %c0_115 = arith.constant 0 : index
      %258 = vector.load %arg23[%c0_114, %c0_115] : memref<1x128xf32, #tpu.memory_space<vmem>>, vector<1x128xf32>
      %259 = vector.broadcast %258 : vector<1x128xf32> to vector<16x128xf32>
      %260 = arith.addf %257, %259 : vector<16x128xf32>
      %261 = vector.shape_cast %260 : vector<16x128xf32> to vector<2x8x128xf32>
      %262 = arith.truncf %261 : vector<2x8x128xf32> to vector<2x8x128xbf16>
      %c0_116 = arith.constant 0 : index
      %c0_117 = arith.constant 0 : index
      %c0_118 = arith.constant 0 : index
      %263 = vector.load %arg24[%c0_116, %c0_117, %c0_118] : memref<2x8x128xbf16, #tpu.memory_space<vmem>>, vector<2x8x128xbf16>
      tpu.vector_store %arg24[%c0_116, %c0_117, %c0_118], %262 {strides = array<i32>} : memref<2x8x128xbf16, #tpu.memory_space<vmem>>, vector<2x8x128xbf16>,
    } else {
    }
    return
  }
  func.func @transform_0(%arg0: i32, %arg1: i32) -> (i32, i32, i32) {
    %c0_i32 = arith.constant 0 : i32
    %c0_i32_0 = arith.constant 0 : i32
    %c0_i32_1 = arith.constant 0 : i32
    return %arg0, %c0_i32, %c0_i32_0 : i32, i32, i32
  }
  func.func @transform_1(%arg0: i32, %arg1: i32) -> (i32, i32, i32) {
    %c0_i32 = arith.constant 0 : i32
    %c0_i32_0 = arith.constant 0 : i32
    %c0_i32_1 = arith.constant 0 : i32
    return %arg0, %c0_i32, %c0_i32_0 : i32, i32, i32
  }
  func.func @transform_2(%arg0: i32, %arg1: i32) -> (i32, i32) {
    %c0_i32 = arith.constant 0 : i32
    %c0_i32_0 = arith.constant 0 : i32
    %c0_i32_1 = arith.constant 0 : i32
    return %c0_i32, %c0_i32_0 : i32, i32
  }
  func.func @transform_3(%arg0: i32, %arg1: i32) -> (i32, i32) {
    %c0_i32 = arith.constant 0 : i32
    %c0_i32_0 = arith.constant 0 : i32
    %c0_i32_1 = arith.constant 0 : i32
    return %c0_i32, %c0_i32_0 : i32, i32
  }
  func.func @transform_4(%arg0: i32, %arg1: i32) -> (i32, i32) {
    %c0_i32 = arith.constant 0 : i32
    %c0_i32_0 = arith.constant 0 : i32
    %c0_i32_1 = arith.constant 0 : i32
    return %c0_i32, %c0_i32_0 : i32, i32
  }
  func.func @transform_5(%arg0: i32, %arg1: i32) -> (i32, i32) {
    %c0_i32 = arith.constant 0 : i32
    %c0_i32_0 = arith.constant 0 : i32
    %c0_i32_1 = arith.constant 0 : i32
    return %c0_i32, %c0_i32_0 : i32, i32
  }
  func.func @transform_6(%arg0: i32, %arg1: i32) -> (i32, i32, i32) {
    %c0_i32 = arith.constant 0 : i32
    %c0_i32_0 = arith.constant 0 : i32
    %c0_i32_1 = arith.constant 0 : i32
    return %arg1, %c0_i32, %c0_i32_0 : i32, i32, i32
  }
  func.func @transform_7(%arg0: i32, %arg1: i32) -> (i32, i32, i32) {
    %c0_i32 = arith.constant 0 : i32
    %c0_i32_0 = arith.constant 0 : i32
    %c0_i32_1 = arith.constant 0 : i32
    return %arg1, %c0_i32, %c0_i32_0 : i32, i32, i32
  }
  func.func @transform_8(%arg0: i32, %arg1: i32) -> (i32, i32, i32) {
    %c0_i32 = arith.constant 0 : i32
    %c0_i32_0 = arith.constant 0 : i32
    %c0_i32_1 = arith.constant 0 : i32
    return %arg1, %c0_i32, %c0_i32_0 : i32, i32, i32
  }
  func.func @transform_9(%arg0: i32, %arg1: i32) -> (i32, i32, i32) {
    %c0_i32 = arith.constant 0 : i32
    %c0_i32_0 = arith.constant 0 : i32
    %c0_i32_1 = arith.constant 0 : i32
    return %arg1, %c0_i32, %c0_i32_0 : i32, i32, i32
  }
  func.func @transform_10(%arg0: i32, %arg1: i32) -> (i32, i32, i32, i32) {
    %c0_i32 = arith.constant 0 : i32
    %c0_i32_0 = arith.constant 0 : i32
    %c0_i32_1 = arith.constant 0 : i32
    %c0_i32_2 = arith.constant 0 : i32
    return %arg1, %c0_i32, %c0_i32_0, %c0_i32_1 : i32, i32, i32, i32
  }
  func.func @transform_11(%arg0: i32, %arg1: i32) -> (i32, i32, i32) {
    %c0_i32 = arith.constant 0 : i32
    %c0_i32_0 = arith.constant 0 : i32
    %c0_i32_1 = arith.constant 0 : i32
    return %arg1, %c0_i32, %c0_i32_0 : i32, i32, i32
  }
  func.func @transform_12(%arg0: i32, %arg1: i32) -> (i32, i32, i32) {
    %c0_i32 = arith.constant 0 : i32
    %c0_i32_0 = arith.constant 0 : i32
    %c0_i32_1 = arith.constant 0 : i32
    return %arg1, %c0_i32, %c0_i32_0 : i32, i32, i32
  }
  func.func @transform_13(%arg0: i32, %arg1: i32) -> (i32, i32, i32) {
    %c0_i32 = arith.constant 0 : i32
    %c0_i32_0 = arith.constant 0 : i32
    %c0_i32_1 = arith.constant 0 : i32
    return %arg1, %c0_i32, %c0_i32_0 : i32, i32, i32
  }
  func.func @transform_14(%arg0: i32, %arg1: i32) -> (i32, i32, i32) {
    %c0_i32 = arith.constant 0 : i32
    %c0_i32_0 = arith.constant 0 : i32
    %c0_i32_1 = arith.constant 0 : i32
    return %arg1, %c0_i32, %c0_i32_0 : i32, i32, i32
  }
  func.func @transform_15(%arg0: i32, %arg1: i32) -> (i32, i32, i32) {
    %c0_i32 = arith.constant 0 : i32
    %c0_i32_0 = arith.constant 0 : i32
    %c0_i32_1 = arith.constant 0 : i32
    return %arg1, %c0_i32, %c0_i32_0 : i32, i32, i32
  }
  func.func @transform_16(%arg0: i32, %arg1: i32) -> (i32, i32, i32) {
    %c0_i32 = arith.constant 0 : i32
    %c0_i32_0 = arith.constant 0 : i32
    %c0_i32_1 = arith.constant 0 : i32
    return %arg1, %c0_i32, %c0_i32_0 : i32, i32, i32
  }
  func.func @transform_17(%arg0: i32, %arg1: i32) -> (i32, i32, i32) {
    %c0_i32 = arith.constant 0 : i32
    %c0_i32_0 = arith.constant 0 : i32
    %c0_i32_1 = arith.constant 0 : i32
    return %arg1, %c0_i32, %c0_i32_0 : i32, i32, i32
  }
  func.func @transform_18(%arg0: i32, %arg1: i32) -> (i32, i32) {
    %c0_i32 = arith.constant 0 : i32
    %c0_i32_0 = arith.constant 0 : i32
    %c0_i32_1 = arith.constant 0 : i32
    return %c0_i32, %c0_i32_0 : i32, i32
  }
  func.func @transform_19(%arg0: i32, %arg1: i32) -> (i32, i32) {
    %c0_i32 = arith.constant 0 : i32
    %c0_i32_0 = arith.constant 0 : i32
    %c0_i32_1 = arith.constant 0 : i32
    return %c0_i32, %c0_i32_0 : i32, i32
  }
  func.func @transform_20(%arg0: i32, %arg1: i32) -> (i32, i32) {
    %c0_i32 = arith.constant 0 : i32
    %c0_i32_0 = arith.constant 0 : i32
    %c0_i32_1 = arith.constant 0 : i32
    return %c0_i32, %c0_i32_0 : i32, i32
  }
  func.func @transform_21(%arg0: i32, %arg1: i32) -> (i32, i32) {
    %c0_i32 = arith.constant 0 : i32
    %c0_i32_0 = arith.constant 0 : i32
    %c0_i32_1 = arith.constant 0 : i32
    return %c0_i32, %c0_i32_0 : i32, i32
  }
  func.func @transform_22(%arg0: i32, %arg1: i32) -> (i32, i32, i32) {
    %c0_i32 = arith.constant 0 : i32
    %c0_i32_0 = arith.constant 0 : i32
    %c0_i32_1 = arith.constant 0 : i32
    return %arg0, %c0_i32, %c0_i32_0 : i32, i32, i32
  }
}

</mosaic_0001>

<bundles_post_ra>
// kernel: tpu_custom_call.1
= control target key start
LH: loop header
LB: loop body
LE: loop exit
PB: predicated region body
PF: predicated region fallthrough
CT: control target
= control target key end

     0   :  { %s3889_s0 = inlined_call_operand.vmem [shape: f32[2,8,16], index: 0, kind: input, shape index: {}]   ;;  %s3890_s1 = inlined_call_operand.vmem [shape: f32[2,8,1], index: 1, kind: input, shape index: {}]   ;;  %s3891_s2 = inlined_call_operand.vmem [shape: f32[8,32], index: 2, kind: input, shape index: {}]   ;;  %s3892_s3 = inlined_call_operand.vmem [shape: bf16[16,32], index: 3, kind: input, shape index: {}]   ;;  %s3893_s4 = inlined_call_operand.vmem [shape: f32[1,32], index: 4, kind: input, shape index: {}]   ;;  %s3894_s5 = inlined_call_operand.vmem [shape: f32[1,32], index: 5, kind: input, shape index: {}]   ;;  %s3895_s6 = inlined_call_operand.vmem [shape: f32[2,1,32], index: 6, kind: input, shape index: {}]   ;;  %s3896_s7 = inlined_call_operand.vmem [shape: f32[2,1,32], index: 7, kind: input, shape index: {}]   ;;  %s3897_s8 = inlined_call_operand.vmem [shape: bf16[2,32,96], index: 8, kind: input, shape index: {}]   ;;  %s3898_s9 = inlined_call_operand.vmem [shape: f32[2,1,96], index: 9, kind: input, shape index: {}]   ;;  %s3899_s10 = inlined_call_operand.vmem [shape: bf16[2,4,8,32], index: 10, kind: input, shape index: {}]   ;;  %s3900_s11 = inlined_call_operand.vmem [shape: f32[2,1,32], index: 11, kind: input, shape index: {}]   ;;  %s3901_s12 = inlined_call_operand.vmem [shape: f32[2,1,32], index: 12, kind: input, shape index: {}]   ;;  %s3902_s13 = inlined_call_operand.vmem [shape: f32[2,1,32], index: 13, kind: input, shape index: {}]   ;;  %s3903_s14 = inlined_call_operand.vmem [shape: bf16[2,32,128], index: 14, kind: input, shape index: {}]   ;;  %s3904_s15 = inlined_call_operand.vmem [shape: f32[2,1,128], index: 15, kind: input, shape index: {}]   ;;  %s3905_s16 = inlined_call_operand.vmem [shape: bf16[2,128,32], index: 16, kind: input, shape index: {}]   ;;  %s3906_s17 = inlined_call_operand.vmem [shape: f32[2,1,32], index: 17, kind: input, shape index: {}]   ;;  %s3907_s18 = inlined_call_operand.vmem [shape: f32[1,32], index: 18, kind: input, shape index: {}]   ;;  %s3908_s19 = inlined_call_operand.vmem [shape: f32[1,32], index: 19, kind: input, shape index: {}]   ;;  %s3909_s20 = inlined_call_operand.vmem [shape: bf16[32,128], index: 20, kind: input, shape index: {}]   ;;  %s3910_s21 = inlined_call_operand.vmem [shape: f32[1,128], index: 21, kind: input, shape index: {}]   ;;  %s3911_s22 = inlined_call_operand.hbm [shape: bf16[2,8,128], index: 22, kind: output, shape index: {}]  }
   0x1   :  { %3916 = sst [smem:[#allocation9_spill]] %s3889_s0 }
   0x2   :  { %3917 = sst [smem:[#allocation10_spill]] %s3890_s1 }
   0x3   :  { %3918 = sst [smem:[#allocation11_spill]] %s3891_s2 }
   0x4   :  { %3919 = sst [smem:[#allocation12_spill]] %s3892_s3 }
   0x5   :  { %3920 = sst [smem:[#allocation13_spill]] %s3893_s4 }
   0x6   :  { %3921 = sst [smem:[#allocation14_spill]] %s3894_s5 }
   0x7   :  { %3922 = sst [smem:[#allocation15_spill]] %s3895_s6 }
   0x8   :  { %3923 = sst [smem:[#allocation16_spill]] %s3897_s8 }
   0x9   :  { %3924 = sst [smem:[#allocation17_spill]] %s3899_s10 }
   0xa   :  { %3925 = sst [smem:[#allocation18_spill]] %s3907_s18 }
   0xb   :  { %3926 = sst [smem:[#allocation19_spill]] %s3908_s19 }
   0xc   :  { %3927 = sst [smem:[#allocation20_spill]] %s3910_s21 }
   0xd   :  { %3928 = sst [smem:[#allocation21_spill]] %s3911_s22 }
   0xe   :  { %27 = vsyncpa [#allocation4], 0  ;;  %s3455_s3 = smov 0   ;;  %s3457_s28 = smov 0  }
   0xf   :  { %s3459_s29 = smov 0  }
  0x10 LB: > { %3929 = sst [smem:[#allocation6_spill]] %s3313_s28  ;;  %s42_s4 = sadd.s32 1, %s3313_s28  ;;  %s3317_s29 = sphi %s3459_s29, %s33_s29   ;;  %s3313_s28 = sphi %s3457_s28, %s3958_s28   ;;  %s3309_s3 = sphi %s3455_s3, %s3957_s3  }
  0x11   : > { %3930 = sst [smem:[#allocation7_spill]] %s3317_s29  ;;  %p43_p0 = scmp.ge.s32.totalorder %s42_s4, 2 }
  0x12   : > { %p2831_p1 = scmp.ge.s32.totalorder %s3317_s29, 1  ;;  %p741_p2 = scmp.lt.s32.totalorder %s3317_s29, 3 }
  0x13   : > { %s3960_s4 = smov (%p43_p0, %s42_s4), 0 }
  0x14   : > { %3931 = sst [smem:[#allocation8_spill]] %s3960_s4  ;;  %p742_p3 = pnand %p2831_p1, %p741_p2 }
  0x15   : > { %p859_p4 = scmp.lt.s32.totalorder (!%p742_p3), %s3309_s3, 1  ;;  %s3933_s8 = sld [smem:[#allocation16_spill]] (!%p742_p3) }
  0x16   : > { %745 = sbr.rel (%p742_p3) target bundleno = 5039 (0x13af), region = 108  ;;  %s3934_s10 = sld [smem:[#allocation17_spill]] (!%p742_p3) }
  0x17   : > { %p2840_p5 = scmp.ne.s32.totalorder (!%p742_p3), %s3309_s3, 0 }
  0x1b   : > { %s3478_s0 = scalar_select %p859_p4, %s3309_s3, 1 }
  0x1c   : > { %s3935_s23 = sld [smem:[#allocation12_spill]] (!%p2840_p5) }
  0x1d   : > { %s2905_s2 = sshll.u32 %s3478_s0, 4  ;;  %s883_s19 = scalar_lea.vmem %s3901_s12, %s3478_s0 }
  0x1e   : > { %s3496_s28 = scalar_lea.vmem %s3933_s8, %s2905_s2  ;;  %s3501_s21 = scalar_lea.vmem %s3934_s10, %s2905_s2 }
  0x1f   : > { %s886_s4 = scalar_lea.vmem %s3902_s13, %s3478_s0  ;;  %s3518_s8 = scalar_lea.vmem %s3903_s14, %s2905_s2 }
  0x20   : > { %s2908_s18 = sshll.u32 %s3478_s0, 6  ;;  %908 = sbr.rel (%p2840_p5) target bundleno = 247 (0xf7), region = 112 }
  0x21   : > { %s3528_s6 = scalar_lea.vmem %s3905_s16, %s2908_s18  ;;  %s3936_s29 = sld [smem:[#allocation9_spill]] (!%p2840_p5) }
  0x22   : > { %s3938_s25 = sld [smem:[#allocation10_spill]] (!%p2840_p5) }
  0x23   : > { %s3939_s22 = sld [smem:[#allocation14_spill]] (!%p2840_p5) }
  0x24   : > { %s3940_s18 = sld [smem:[#allocation13_spill]] (!%p2840_p5) }
  0x25   : > { %v3200_v0 = vld [vmem:[%s3935_s23] sm:$0xff]   ;;  %v3319_v1 = vmov 0.0   ;;  %vm3320_vm0 = vmmov 0   ;;  %vm927_vm1 = vcmask 130048   ;;  %v3321_v6 = vmov 0   ;;  %s3941_s30 = sld [smem:[#allocation11_spill]] }
  0x26   : > { %2978 = vmatprep.subr.bf16.mxu0 %v3319_v1  ;;  %2980 = vmatprep.mubr.msk.bf16.mxu0 %vm3320_vm0, %v3319_v1  ;;  %vm998_vm2 = vcmask 261120  }
  0x27   : > { %s3937_s10 = smov %s3936_s29  ;;  %v909_v2 = vld [vmem:[%s3936_s29] sm:$0xff]  ;;  %2979 = vmatpush3.bf16.msra.mxu0 %v3200_v0  ;;  %3199 = vset.pattern.permute.xlu0 %v3321_v6 }
  0x28   : > { %v910_v3 = vld [vmem:[%s3937_s10 + $0x8] sm:$0xff]  ;;  %v972_v4 = vld [vmem:[%s3938_s25] sm:$0xff] }
  0x29   : > { %v911_v5 = vpack.c.bf16 %v910_v3, %v909_v2  ;;  %977 = vperm.xlu0 %3199, %v972_v4   ;;  %v973_v7 = vld [vmem:[%s3938_s25 + $0x8] sm:$0xff]  ;;  %v2844_v8 = vld [vmem:[%s3939_s22] ss:$0 sm:$0xff] }
  0x2a   : > { %v2841_v10 = vld [vmem:[%s3940_s18] ss:$0 sm:$0xff] }
  0x2b   : > { %2981 = vmatmul.mubr.msk.bf16.vlgmr.msra.gmra.mxu0 %vm927_vm1, %v911_v5  ;;  %v995_v15 = vld [vmem:[%s3941_s30] sm:$0xff] }
  0x2d   : > { %982 = vperm.xlu0 %3199, %v973_v7  }
  0xa4   : > { %v978_v9 = vpop.permute.xlu0 %977 }
  0xa5   : > { %v991_v11 = vmul.f32 %v2844_v8, %v978_v9 }
  0xa8   : > { %v983_v14 = vpop.permute.xlu0 %982 }
  0xa9   : > { %v992_v19 = vmul.f32 %v2844_v8, %v983_v14 }
  0xeb   : > { %v965_v12 = vpop.f32.mrf.mxu0 }
  0xec   : > { %v966_v13 = vadd.f32 %v2841_v10, %v965_v12 }
  0xed   : > { %v2982_v16 = vpop.f32.mrf.mxu0 }
  0xee   : > { %v993_v17 = vadd.f32 %v991_v11, %v966_v13 }
  0xef   : > { %v968_v18 = vpop.f32.mrf.mxu0 }
  0xf0   : > { %v996_v20 = vadd.f32 %v995_v15, %v993_v17  ;;  %v969_v21 = vadd.f32 %v2841_v10, %v968_v18 }
  0xf1   : > { %v2983_v22 = vpop.f32.mrf.mxu0 }
  0xf2   : > { %999 = vst.msk [vmem:[#allocation2] sm:$0xff] %vm998_vm2, %v996_v20  ;;  %v994_v23 = vadd.f32 %v992_v19, %v969_v21 }
  0xf4   : > { %v997_v24 = vadd.f32 %v995_v15, %v994_v23 }
  0xf6   : > { %1000 = vst.msk [vmem:[#allocation2 + $0x8] sm:$0xff] %vm998_vm2, %v997_v24 }
  0xf7 PF: > { %vm1005_vm3 = vcmask 261120   ;;  %v3201_v39 = vld [vmem:[%s3496_s28 + $0x8] sm:$0xff]   ;;  %v3322_v40 = vmov 0.0   ;;  %vm3323_vm4 = vmmov 0   ;;  %v3202_v41 = vld [vmem:[%s3496_s28] sm:$0xff]   ;;  %s3942_s27 = sld [smem:[#allocation15_spill]]  ;;  %s3944_s22 = scalar_lea.vmem %s3896_s7, %s3478_s0 }
  0xf8   : > { %2984 = vmatprep.subr.bf16.mxu1 %v3322_v40  ;;  %2988 = vmatprep.mubr.msk.bf16.mxu1 %vm3323_vm4, %v3322_v40  ;;  %v2846_v54 = vld [vmem:[%s3944_s22] ss:$0 sm:$0xff]  ;;  %s3945_s18 = scalar_lea.vmem %s3898_s9, %s3478_s0  ;;  %s3324_s5 = smov 96   ;;  %vm1132_vm5 = vcmask 64512   ;;  %vm1257_vm6 = vcmask 1043456  }
  0xf9   : > { %v3559_v25 = vld [vmem:[#allocation2] sm:$0xff]  ;;  %2985 = vmatpush3.bf16.msra.mxu1 %v3201_v39  ;;  %3010 = vmatprep.subr.bf16.mxu0 %v3322_v40  ;;  %s3325_s26 = smov 64   ;;  %s3326_s28 = smov 88  }
  0xfa   : > { %v1006_v27 = vsel %vm1005_vm3, %v3559_v25, 0.0  ;;  %2986 = vmatprep.subr.bf16.mxu1 %v3322_v40  ;;  %3012 = vmatprep.mubr.msk.bf16.mxu0 %vm3323_vm4, %v3322_v40  ;;  %v2847_v59 = vld [vmem:[%s3945_s18] ss:$0 sm:$0xff]  ;;  %s3327_s30 = smov 120   ;;  %s3330_s23 = smov 112  }
  0xfb   : > { %1007 = vadd.xlane.f32.xlu0 %v1006_v27  ;;  %s3331_s1 = smov 48   ;;  %s3332_s22 = smov 72  }
  0xfc   : > { %s3333_s29 = smov 104   ;;  %s3334_s24 = smov 40  }
  0xfd   : > { %v3561_v26 = vld [vmem:[#allocation2 + $0x8] sm:$0xff]  ;;  %2987 = vmatpush3.bf16.msra.mxu1 %v3202_v41  ;;  %s3943_s2 = scalar_lea.vmem %s3942_s27, %s3478_s0  ;;  %s3328_s27 = smov 56  }
  0xfe   : > { %v1009_v28 = vsel %vm1005_vm3, %v3561_v26, 0.0  ;;  %2992 = vmatprep.subr.bf16.mxu1 %v3322_v40  ;;  %v2845_v50 = vld [vmem:[%s3943_s2] ss:$0 sm:$0xff]  ;;  %s3329_s2 = smov 80   ;;  %p2894_p6 = scmp.ne.s32.totalorder %s3309_s3, 1 }
  0xff   : > { %1010 = vadd.xlane.f32.xlu0 %v1009_v28  ;;  %s3949_s18 = sld [smem:[#allocation18_spill]] (!%p2894_p6) }
 0x184   : > { %v1008_v29 = vpop.xlane.xlu0 %1007 }
 0x185   : > { %v1013_v30 = vmul.f32 0.03125, %v1008_v29 }
 0x187   : > { %v1015_v31 = vsub.f32 %v3559_v25, %v1013_v30 }
 0x188   : > { %v1011_v32 = vpop.xlane.xlu0 %1010 }
 0x189   : > { %v1014_v33 = vmul.f32 0.03125, %v1011_v32  ;;  %v1017_v34 = vmul.f32 %v1015_v31, %v1015_v31 }
 0x18b   : > { %v1016_v35 = vsub.f32 %v3561_v26, %v1014_v33  ;;  %v1019_v36 = vsel %vm1005_vm3, %v1017_v34, 0.0 }
 0x18c   : > { %1020 = vadd.xlane.f32.xlu1 %v1019_v36 }
 0x18d   : > { %v1018_v37 = vmul.f32 %v1016_v35, %v1016_v35 }
 0x18f   : > { %v1022_v38 = vsel %vm1005_vm3, %v1018_v37, 0.0 }
 0x190   : > { %1023 = vadd.xlane.f32.xlu1 %v1022_v38 }
 0x215   : > { %v1021_v42 = vpop.xlane.xlu1 %1020 }
 0x216   : > { %v1025_v43 = vmul.f32 0.03125, %v1021_v42 }
 0x218   : > { %v1027_v44 = vadd.f32 1e-05, %v1025_v43 }
 0x219   : > { %v1024_v45 = vpop.xlane.xlu1 %1023 }
 0x21a   : > { %3213 = vrsqrt.f32 %v1027_v44  ;;  %v1026_v46 = vmul.f32 0.03125, %v1024_v45 }
 0x21c   : > { %v1028_v47 = vadd.f32 1e-05, %v1026_v46 }
 0x21e   : > { %3215 = vrsqrt.f32 %v1028_v47 }
 0x227   : > { %v3214_v48 = vpop.eup %3213 }
 0x228   : > { %v1031_v49 = vmul.f32 %v3214_v48, %v1015_v31 }
 0x22a   : > { %v1039_v53 = vmul.f32 %v2845_v50, %v1031_v49 }
 0x22b   : > { %v3216_v51 = vpop.eup %3215 }
 0x22c   : > { %v1032_v52 = vmul.f32 %v3216_v51, %v1016_v35  ;;  %v1047_v56 = vadd.f32 %v2846_v54, %v1039_v53 }
 0x22e   : > { %v1040_v55 = vmul.f32 %v2845_v50, %v1032_v52 }
 0x230   : > { %v1048_v57 = vadd.f32 %v2846_v54, %v1040_v55 }
 0x232   : > { %v1049_v58 = vpack.c.bf16 %v1048_v57, %v1047_v56 }
 0x234   : > { %2989 = vmatmul.mubr.msk.bf16.vlgmr.msra.gmra.mxu1 %vm1005_vm3, %v1049_v58 }
 0x235   : > { %2994 = vmatprep.mubr.msk.bf16.mxu1 %vm3323_vm4, %v3322_v40 }
 0x2f4   : > { %v1110_v60 = vpop.f32.mrf.mxu1 }
 0x2f5   : > { %v1111_v61 = vadd.f32 %v2847_v59, %v1110_v60 }
 0x2f6   : > { %v2990_v62 = vpop.f32.mrf.mxu1 }
 0x2f7   : > { %v3599_v63 = vpack.c.bf16 %v1111_v61, %v1111_v61  ;;  %v1117_v6 = vmul.f32 0.35355338, %v1111_v61 }
 0x2f8   : > { %v1113_v0 = vpop.f32.mrf.mxu1 }
 0x2f9   : > { %v1114_v1 = vadd.f32 %v2847_v59, %v1113_v0  ;;  %1130 = vrot.lane.b32.xlu0 %v3599_v63, %s3324_s5  ;;  %v3607_v8 = vpack.c.bf16 %v1117_v6, %v1117_v6 }
 0x2fa   : > { %v2991_v2 = vpop.f32.mrf.mxu1 }
 0x2fb   : > { %v3602_v3 = vpack.c.bf16 %v1114_v1, %v1114_v1  ;;  %v1118_v10 = vmul.f32 0.35355338, %v1114_v1 }
 0x2fd   : > { %1180 = vrot.lane.b32.xlu1 %v3602_v3, %s3324_s5  ;;  %v3615_v11 = vpack.c.bf16 %v1118_v10, %v1118_v10  ;;  %s3946_s5 = scalar_lea.vmem %s3900_s11, %s3478_s0 }
 0x36b   : > { %v1131_v4 = vpop.permute.xlu0 %1130 }
 0x36c   : > { %v1137_v5 = vsel %vm1132_vm5, %v1131_v4, 0 }
 0x36d   : > { %2993 = vmatpush3.bf16.xpose.msra.mxu1 %v1137_v5 }
 0x36e   : > { %2998 = vmatprep.subr.bf16.mxu1 %v3322_v40 }
 0x36f   : > { %v1181_v7 = vpop.permute.xlu1 %1180 }
 0x370   : > { %v1186_v9 = vsel %vm1132_vm5, %v1181_v7, 0 }
 0x374   : > { %2995 = vmatmul.mubr.msk.bf16.vlgmr.msra.gmra.mxu1 %vm1132_vm5, %v3607_v8 }
 0x375   : > { %2999 = vmatpush3.bf16.xpose.msra.mxu1 %v1186_v9  ;;  %3000 = vmatprep.mubr.msk.bf16.mxu1 %vm3323_vm4, %v3322_v40 }
 0x376   : > { %3004 = vmatprep.subr.bf16.mxu1 %v3322_v40 }
 0x37c   : > { %3001 = vmatmul.mubr.msk.bf16.vlgmr.msra.gmra.mxu1 %vm1132_vm5, %v3615_v11 }
 0x37d   : > { %3006 = vmatprep.mubr.msk.bf16.mxu1 %vm3323_vm4, %v3322_v40 }
 0x434   : > { %v1173_v12 = vpop.f32.mrf.mxu1 }
 0x435   : > { %v1228_v13 = vsel %vm1132_vm5, %v1173_v12, -inf }
 0x436   : > { %1229 = vmax.xlane.f32.xlu1 %v1228_v13  ;;  %v2996_v14 = vpop.f32.mrf.mxu1 }
 0x438   : > { %v1176_v15 = vpop.f32.mrf.mxu1 }
 0x43a   : > { %v2997_v16 = vpop.f32.mrf.mxu1 }
 0x43c   : > { %v1222_v17 = vpop.f32.mrf.mxu1 }
 0x43d   : > { %v1231_v18 = vsel %vm1132_vm5, %v1222_v17, -inf }
 0x43e   : > { %1232 = vmax.xlane.f32.xlu0 %v1231_v18  ;;  %v3002_v19 = vpop.f32.mrf.mxu1 }
 0x440   : > { %v1225_v20 = vpop.f32.mrf.mxu1 }
 0x442   : > { %v3003_v21 = vpop.f32.mrf.mxu1 }
 0x447   : > { %1301 = vrot.lane.b32.xlu1 %v3602_v3, %s3325_s26 }
 0x44b   : > { %1353 = vrot.lane.b32.xlu1 %v3599_v63, %s3326_s28 }
 0x4bf   : > { %v1230_v22 = vpop.xlane.xlu1 %1229 }
 0x4c0   : > { %v1234_v23 = vsub.f32 %v1173_v12, %v1230_v22 }
 0x4c2   : > { %v1236_v24 = vmul.f32 1.442695, %v1234_v23 }
 0x4c3   : > { %v1302_v27 = vpop.permute.xlu1 %1301 }
 0x4c4   : > { %3217 = vpow2.f32 %v1236_v24  ;;  %v1307_v28 = vsel %vm1257_vm6, %v1302_v27, 0 }
 0x4c5   : > { %3011 = vmatpush3.bf16.msra.mxu0 %v1307_v28 }
 0x4c6   : > { %3022 = vmatprep.subr.bf16.mxu0 %v3322_v40 }
 0x4c7   : > { %v1233_v29 = vpop.xlane.xlu0 %1232  ;;  %v1354_v37 = vpop.permute.xlu1 %1353 }
 0x4c8   : > { %v1235_v30 = vsub.f32 %v1222_v17, %v1233_v29  ;;  %v1359_v45 = vsel %vm1132_vm5, %v1354_v37, 0 }
 0x4ca   : > { %v1238_v31 = vmul.f32 1.442695, %v1235_v30 }
 0x4cc   : > { %3219 = vpow2.f32 %v1238_v31 }
 0x4d1   : > { %v3218_v32 = vpop.eup %3217 }
 0x4d2   : > { %v1240_v33 = vsel %vm1132_vm5, %v3218_v32, 0.0 }
 0x4d3   : > { %1241 = vadd.xlane.f32.xlu0 %v1240_v33 }
 0x4d9   : > { %v3220_v34 = vpop.eup %3219 }
 0x4da   : > { %v1243_v35 = vsel %vm1132_vm5, %v3220_v34, 0.0 }
 0x4db   : > { %1244 = vadd.xlane.f32.xlu1 %v1243_v35 }
 0x4e9   : > { %1252 = vrot.lane.b32.xlu0 %v3599_v63, %s3325_s26 }
 0x4ec   : > { %1403 = vrot.lane.b32.xlu1 %v3602_v3, %s3326_s28 }
 0x4ed   : > { %1351 = vrot.lane.b32.xlu0 %v3607_v8, %s3327_s30 }
 0x4f0   : > { %1401 = vrot.lane.b32.xlu1 %v3615_v11, %s3327_s30  ;;  %s3950_s30 = sld [smem:[#allocation19_spill]] (!%p2894_p6) }
 0x55c   : > { %v1242_v36 = vpop.xlane.xlu0 %1241 }
 0x55d   : > { %3221 = vrcp.f32 %v1242_v36 }
 0x560   : > { %v1253_v38 = vpop.permute.xlu0 %1252 }
 0x561   : > { %v1259_v39 = vsel %vm1257_vm6, %v1253_v38, 0 }
 0x562   : > { %3005 = vmatpush3.bf16.msra.mxu1 %v1259_v39 }
 0x563   : > { %3016 = vmatprep.subr.bf16.mxu1 %v3322_v40 }
 0x564   : > { %v1245_v41 = vpop.xlane.xlu1 %1244  ;;  %v1352_v50 = vpop.permute.xlu0 %1351 }
 0x565   : > { %3223 = vrcp.f32 %v1245_v41 }
 0x568   : > { %v1404_v48 = vpop.permute.xlu1 %1403 }
 0x569   : > { %v1409_v51 = vsel %vm1132_vm5, %v1404_v48, 0 }
 0x56a   : > { %v3222_v42 = vpop.eup %3221 }
 0x56b   : > { %v1248_v43 = vmul.f32 %v3222_v42, %v3218_v32 }
 0x56c   : > { %v1402_v52 = vpop.permute.xlu1 %1401 }
 0x56d   : > { %v1250_v44 = vpack.c.bf16 %v1248_v43, %v1248_v43  ;;  %v2863_v43 = vld [vmem:[%s3501_s21 + $0x4] sm:$0xf] }
 0x56f   : > { %3007 = vmatmul.mubr.msk.bf16.vlgmr.msra.gmra.mxu1 %vm1132_vm5, %v1250_v44  ;;  %v1578_v44 = vsel %vm1257_vm6, %v2863_v43, 0 }
 0x570   : > { %3017 = vmatpush3.bf16.xpose.msra.mxu1 %v1359_v45  ;;  %3018 = vmatprep.mubr.msk.bf16.mxu1 %vm3323_vm4, %v3322_v40 }
 0x571   : > { %3028 = vmatprep.subr.bf16.mxu1 %v3322_v40 }
 0x572   : > { %v3224_v46 = vpop.eup %3223 }
 0x573   : > { %v1249_v47 = vmul.f32 %v3224_v46, %v3220_v34  ;;  %v1350_v34 = vld [vmem:[%s3501_s21] sm:$0xf] }
 0x574   : > { %v1625_v37 = vsel %vm1257_vm6, %v1350_v34, 0 }
 0x575   : > { %v1251_v49 = vpack.c.bf16 %v1249_v47, %v1249_v47 }
 0x577   : > { %3013 = vmatmul.mubr.msk.bf16.vlgmr.msra.gmra.mxu0 %vm1132_vm5, %v1251_v49  ;;  %3019 = vmatmul.mubr.msk.bf16.vlgmr.msra.gmra.mxu1 %vm1132_vm5, %v1352_v50 }
 0x578   : > { %3023 = vmatpush3.bf16.xpose.msra.mxu0 %v1409_v51  ;;  %3024 = vmatprep.mubr.msk.bf16.mxu0 %vm3323_vm4, %v3322_v40 }
 0x579   : > { %3034 = vmatprep.subr.bf16.mxu0 %v3322_v40  ;;  %3030 = vmatprep.mubr.msk.bf16.mxu1 %vm3323_vm4, %v3322_v40 }
 0x57f   : > { %3025 = vmatmul.mubr.msk.bf16.vlgmr.msra.gmra.mxu0 %vm1132_vm5, %v1402_v52 }
 0x580   : > { %3036 = vmatprep.mubr.msk.bf16.mxu0 %vm3323_vm4, %v3322_v40 }
 0x62f   : > { %v3653_v53 = vpop.f32.mrf.mxu1 }
 0x631   : > { %v3008_v54 = vpop.f32.mrf.mxu1 }
 0x633   : > { %v1298_v55 = vpop.f32.mrf.mxu1 }
 0x635   : > { %v3009_v56 = vpop.f32.mrf.mxu1 }
 0x637   : > { %v3655_v57 = vpop.f32.mrf.mxu0  ;;  %v1395_v58 = vpop.f32.mrf.mxu1 }
 0x638   : > { %v1349_v59 = vpack.c.bf16 %v3655_v57, %v3653_v53  ;;  %v1451_v60 = vsel %vm1132_vm5, %v1395_v58, -inf }
 0x639   : > { %v3014_v61 = vpop.f32.mrf.mxu0  ;;  %1452 = vmax.xlane.f32.xlu0 %v1451_v60  ;;  %v3020_v62 = vpop.f32.mrf.mxu1 }
 0x63b   : > { %v1346_v0 = vpop.f32.mrf.mxu0  ;;  %v1398_v1 = vpop.f32.mrf.mxu1 }
 0x63d   : > { %v3015_v2 = vpop.f32.mrf.mxu0  ;;  %v3021_v4 = vpop.f32.mrf.mxu1 }
 0x63f   : > { %v1445_v5 = vpop.f32.mrf.mxu0 }
 0x640   : > { %v1454_v6 = vsel %vm1132_vm5, %v1445_v5, -inf }
 0x641   : > { %1455 = vmax.xlane.f32.xlu1 %v1454_v6  ;;  %v3026_v7 = vpop.f32.mrf.mxu0 }
 0x643   : > { %v1448_v9 = vpop.f32.mrf.mxu0 }
 0x645   : > { %v3027_v10 = vpop.f32.mrf.mxu0 }
 0x652   : > { %1523 = vrot.lane.b32.xlu1 %v3602_v3, %s3328_s27 }
 0x656   : > { %1670 = vrot.lane.b32.xlu1 %v3599_v63, %s3329_s2 }
 0x65a   : > { %1720 = vrot.lane.b32.xlu1 %v3602_v3, %s3329_s2  ;;  %s3947_s2 = scalar_lea.vmem %s3904_s15, %s3478_s0 }
 0x65e   : > { %1718 = vrot.lane.b32.xlu1 %v3615_v11, %s3330_s23 }
 0x6c2   : > { %v1453_v12 = vpop.xlane.xlu0 %1452 }
 0x6c3   : > { %v1457_v13 = vsub.f32 %v1395_v58, %v1453_v12 }
 0x6c5   : > { %v1459_v14 = vmul.f32 1.442695, %v1457_v13 }
 0x6c7   : > { %3225 = vpow2.f32 %v1459_v14 }
 0x6ca   : > { %v1456_v15 = vpop.xlane.xlu1 %1455 }
 0x6cb   : > { %v1458_v16 = vsub.f32 %v1445_v5, %v1456_v15 }
 0x6cd   : > { %v1461_v17 = vmul.f32 1.442695, %v1458_v16 }
 0x6ce   : > { %v1524_v18 = vpop.permute.xlu1 %1523 }
 0x6cf   : > { %3227 = vpow2.f32 %v1461_v17  ;;  %v1529_v19 = vsel %vm1257_vm6, %v1524_v18, 0 }
 0x6d0   : > { %3035 = vmatpush3.bf16.msra.mxu0 %v1529_v19 }
 0x6d1   : > { %3046 = vmatprep.subr.bf16.mxu0 %v3322_v40 }
 0x6d2   : > { %v1671_v38 = vpop.permute.xlu1 %1670 }
 0x6d3   : > { %v1676_v52 = vsel %vm1132_vm5, %v1671_v38, 0 }
 0x6d4   : > { %v3226_v20 = vpop.eup %3225 }
 0x6d5   : > { %v1463_v21 = vsel %vm1132_vm5, %v3226_v20, 0.0 }
 0x6d6   : > { %1464 = vadd.xlane.f32.xlu0 %v1463_v21  ;;  %v1721_v39 = vpop.permute.xlu1 %1720 }
 0x6d7   : > { %v1726_v41 = vsel %vm1132_vm5, %v1721_v39, 0 }
 0x6da   : > { %v1719_v42 = vpop.permute.xlu1 %1718 }
 0x6dc   : > { %v3228_v22 = vpop.eup %3227 }
 0x6dd   : > { %v1466_v23 = vsel %vm1132_vm5, %v3228_v22, 0.0 }
 0x6de   : > { %1467 = vadd.xlane.f32.xlu0 %v1466_v23 }
 0x6f4   : > { %1475 = vrot.lane.b32.xlu0 %v3599_v63, %s3328_s27 }
 0x6f8   : > { %1668 = vrot.lane.b32.xlu0 %v3607_v8, %s3330_s23 }
 0x75f   : > { %v1465_v24 = vpop.xlane.xlu0 %1464 }
 0x760   : > { %3229 = vrcp.f32 %v1465_v24 }
 0x767   : > { %v1468_v27 = vpop.xlane.xlu0 %1467 }
 0x768   : > { %3231 = vrcp.f32 %v1468_v27 }
 0x76b   : > { %v1476_v28 = vpop.permute.xlu0 %1475 }
 0x76c   : > { %v1481_v29 = vsel %vm1257_vm6, %v1476_v28, 0 }
 0x76d   : > { %v3230_v30 = vpop.eup %3229  ;;  %3029 = vmatpush3.bf16.msra.mxu1 %v1481_v29 }
 0x76e   : > { %v1471_v31 = vmul.f32 %v3230_v30, %v3226_v20  ;;  %3040 = vmatprep.subr.bf16.mxu1 %v3322_v40 }
 0x76f   : > { %v1669_v56 = vpop.permute.xlu0 %1668 }
 0x770   : > { %v1473_v32 = vpack.c.bf16 %v1471_v31, %v1471_v31 }
 0x772   : > { %3031 = vmatmul.mubr.msk.bf16.vlgmr.msra.gmra.mxu1 %vm1132_vm5, %v1473_v32 }
 0x773   : > { %3042 = vmatprep.mubr.msk.bf16.mxu1 %vm3323_vm4, %v3322_v40  ;;  %3041 = vmatpush3.bf16.msra.mxu1 %v1578_v44  ;;  %v2870_v44 = vld [vmem:[%s3501_s21 + $0x8] sm:$0xf] }
 0x774   : > { %3052 = vmatprep.subr.bf16.mxu1 %v3322_v40 }
 0x775   : > { %v3232_v33 = vpop.eup %3231 }
 0x776   : > { %v1472_v35 = vmul.f32 %v3232_v33, %v3228_v22 }
 0x778   : > { %v1474_v36 = vpack.c.bf16 %v1472_v35, %v1472_v35 }
 0x77a   : > { %3037 = vmatmul.mubr.msk.bf16.vlgmr.msra.gmra.mxu0 %vm1132_vm5, %v1474_v36 }
 0x77b   : > { %3047 = vmatpush3.bf16.msra.mxu0 %v1625_v37  ;;  %3048 = vmatprep.mubr.msk.bf16.mxu0 %vm3323_vm4, %v3322_v40 }
 0x77c   : > { %3058 = vmatprep.subr.bf16.mxu0 %v3322_v40 }
 0x782   : > { %3049 = vmatmul.mubr.msk.bf16.vlgmr.msra.gmra.mxu0 %vm1132_vm5, %v1349_v59 }
 0x783   : > { %3059 = vmatpush3.bf16.xpose.msra.mxu0 %v1726_v41  ;;  %3060 = vmatprep.mubr.msk.bf16.mxu0 %vm3323_vm4, %v3322_v40 }
 0x784   : > { %3070 = vmatprep.subr.bf16.mxu0 %v3322_v40 }
 0x78a   : > { %3061 = vmatmul.mubr.msk.bf16.vlgmr.msra.gmra.mxu0 %vm1132_vm5, %v1719_v42 }
 0x78b   : > { %3072 = vmatprep.mubr.msk.bf16.mxu0 %vm3323_vm4, %v3322_v40 }
 0x832   : > { %v1517_v45 = vpop.f32.mrf.mxu1 }
 0x834   : > { %v3032_v46 = vpop.f32.mrf.mxu1 }
 0x836   : > { %v1520_v47 = vpop.f32.mrf.mxu1 }
 0x838   : > { %v3033_v48 = vpop.f32.mrf.mxu1 }
 0x83a   : > { %v1565_v49 = vpop.f32.mrf.mxu0 }
 0x83b   : > { %v1571_v50 = vpack.c.bf16 %v1565_v49, %v1517_v45  ;;  %v1895_v45 = vsel %vm1257_vm6, %v2870_v44, 0 }
 0x83c   : > { %v3038_v51 = vpop.f32.mrf.mxu0 }
 0x83d   : > { %3043 = vmatmul.mubr.msk.bf16.vlgmr.msra.gmra.mxu1 %vm1132_vm5, %v1571_v50 }
 0x83e   : > { %3053 = vmatpush3.bf16.xpose.msra.mxu1 %v1676_v52  ;;  %v1568_v53 = vpop.f32.mrf.mxu0  ;;  %3054 = vmatprep.mubr.msk.bf16.mxu1 %vm3323_vm4, %v3322_v40 }
 0x83f   : > { %3064 = vmatprep.subr.bf16.mxu1 %v3322_v40 }
 0x840   : > { %v3039_v54 = vpop.f32.mrf.mxu0 }
 0x842   : > { %v3701_v55 = vpop.f32.mrf.mxu0 }
 0x844   : > { %v3050_v57 = vpop.f32.mrf.mxu0 }
 0x845   : > { %3055 = vmatmul.mubr.msk.bf16.vlgmr.msra.gmra.mxu1 %vm1132_vm5, %v1669_v56 }
 0x846   : > { %v3704_v58 = vpop.f32.mrf.mxu0  ;;  %3066 = vmatprep.mubr.msk.bf16.mxu1 %vm3323_vm4, %v3322_v40 }
 0x848   : > { %v3051_v59 = vpop.f32.mrf.mxu0 }
 0x84a   : > { %v1762_v60 = vpop.f32.mrf.mxu0 }
 0x84b   : > { %v1771_v61 = vsel %vm1132_vm5, %v1762_v60, -inf }
 0x84c   : > { %1772 = vmax.xlane.f32.xlu1 %v1771_v61  ;;  %v3062_v62 = vpop.f32.mrf.mxu0 }
 0x84e   : > { %v1765_v0 = vpop.f32.mrf.mxu0 }
 0x850   : > { %v3063_v1 = vpop.f32.mrf.mxu0 }
 0x85d   : > { %1840 = vrot.lane.b32.xlu1 %v3602_v3, %s3331_s1 }
 0x861   : > { %1942 = vrot.lane.b32.xlu1 %v3599_v63, %s3332_s22 }
 0x865   : > { %1992 = vrot.lane.b32.xlu1 %v3602_v3, %s3332_s22 }
 0x869   : > { %1990 = vrot.lane.b32.xlu1 %v3615_v11, %s3333_s29 }
 0x8d5   : > { %v1773_v2 = vpop.xlane.xlu1 %1772 }
 0x8d6   : > { %v1775_v6 = vsub.f32 %v1762_v60, %v1773_v2 }
 0x8d8   : > { %v1778_v7 = vmul.f32 1.442695, %v1775_v6 }
 0x8d9   : > { %v1841_v4 = vpop.permute.xlu1 %1840 }
 0x8da   : > { %v1846_v5 = vsel %vm1257_vm6, %v1841_v4, 0  ;;  %3233 = vpow2.f32 %v1778_v7 }
 0x8db   : > { %3071 = vmatpush3.bf16.msra.mxu0 %v1846_v5 }
 0x8dc   : > { %3082 = vmatprep.subr.bf16.mxu0 %v3322_v40 }
 0x8dd   : > { %v1943_v30 = vpop.permute.xlu1 %1942 }
 0x8de   : > { %v1948_v32 = vsel %vm1132_vm5, %v1943_v30, 0 }
 0x8e1   : > { %v1993_v51 = vpop.permute.xlu1 %1992 }
 0x8e2   : > { %v1998_v56 = vsel %vm1132_vm5, %v1993_v51, 0 }
 0x8e5   : > { %v1991_v60 = vpop.permute.xlu1 %1990 }
 0x8e7   : > { %v3234_v11 = vpop.eup %3233 }
 0x8e8   : > { %v1783_v18 = vsel %vm1132_vm5, %v3234_v11, 0.0 }
 0x8fd   : > { %v3717_v9 = vpop.f32.mrf.mxu1 }
 0x8fe   : > { %v1662_v4 = vadd.f32 %v3701_v55, %v3717_v9 }
 0x8ff   : > { %v3044_v10 = vpop.f32.mrf.mxu1 }
 0x901   : > { %v3719_v12 = vpop.f32.mrf.mxu1 }
 0x902   : > { %v1665_v10 = vadd.f32 %v3704_v58, %v3719_v12 }
 0x903   : > { %v3045_v13 = vpop.f32.mrf.mxu1 }
 0x905   : > { %v1712_v14 = vpop.f32.mrf.mxu1 }
 0x906   : > { %v1768_v15 = vsel %vm1132_vm5, %v1712_v14, -inf }
 0x907   : > { %1769 = vmax.xlane.f32.xlu0 %v1768_v15  ;;  %v3056_v16 = vpop.f32.mrf.mxu1 }
 0x909   : > { %v1715_v17 = vpop.f32.mrf.mxu1 }
 0x90b   : > { %1784 = vadd.xlane.f32.xlu0 %v1783_v18  ;;  %v3057_v19 = vpop.f32.mrf.mxu1 }
 0x990   : > { %v1770_v20 = vpop.xlane.xlu0 %1769 }
 0x991   : > { %v1774_v21 = vsub.f32 %v1712_v14, %v1770_v20 }
 0x993   : > { %v1776_v22 = vmul.f32 1.442695, %v1774_v21 }
 0x994   : > { %v1785_v23 = vpop.xlane.xlu0 %1784 }
 0x995   : > { %3235 = vpow2.f32 %v1776_v22 }
 0x996   : > { %3237 = vrcp.f32 %v1785_v23 }
 0x9a2   : > { %v3236_v24 = vpop.eup %3235 }
 0x9a3   : > { %v3238_v27 = vpop.eup %3237  ;;  %v1780_v28 = vsel %vm1132_vm5, %v3236_v24, 0.0 }
 0x9a4   : > { %1781 = vadd.xlane.f32.xlu0 %v1780_v28  ;;  %v1789_v29 = vmul.f32 %v3238_v27, %v3234_v11 }
 0x9a6   : > { %v1791_v31 = vpack.c.bf16 %v1789_v29, %v1789_v29 }
 0x9a8   : > { %3073 = vmatmul.mubr.msk.bf16.vlgmr.msra.gmra.mxu0 %vm1132_vm5, %v1791_v31 }
 0x9a9   : > { %3083 = vmatpush3.bf16.xpose.msra.mxu0 %v1948_v32  ;;  %3084 = vmatprep.mubr.msk.bf16.mxu0 %vm3323_vm4, %v3322_v40 }
 0x9aa   : > { %3094 = vmatprep.subr.bf16.mxu0 %v3322_v40 }
 0x9ba   : > { %1792 = vrot.lane.b32.xlu0 %v3599_v63, %s3331_s1  ;;  %s3948_s1 = scalar_lea.vmem %s3906_s17, %s3478_s0 }
 0x9be   : > { %1940 = vrot.lane.b32.xlu0 %v3607_v8, %s3333_s29 }
 0xa2d   : > { %v1782_v33 = vpop.xlane.xlu0 %1781 }
 0xa2e   : > { %3239 = vrcp.f32 %v1782_v33  ;;  %v2876_v33 = vld [vmem:[%s3501_s21 + $0xc] sm:$0xf] }
 0xa31   : > { %v1793_v34 = vpop.permute.xlu0 %1792 }
 0xa32   : > { %v1798_v35 = vsel %vm1257_vm6, %v1793_v34, 0  ;;  %v2167_v34 = vsel %vm1257_vm6, %v2876_v33, 0 }
 0xa33   : > { %3065 = vmatpush3.bf16.msra.mxu1 %v1798_v35 }
 0xa34   : > { %3076 = vmatprep.subr.bf16.mxu1 %v3322_v40 }
 0xa35   : > { %v1941_v36 = vpop.permute.xlu0 %1940 }
 0xa36   : > { %3085 = vmatmul.mubr.msk.bf16.vlgmr.msra.gmra.mxu0 %vm1132_vm5, %v1941_v36 }
 0xa37   : > { %3096 = vmatprep.mubr.msk.bf16.mxu0 %vm3323_vm4, %v3322_v40 }
 0xa3b   : > { %v3240_v37 = vpop.eup %3239 }
 0xa3c   : > { %v1788_v38 = vmul.f32 %v3240_v37, %v3236_v24 }
 0xa3e   : > { %v1790_v39 = vpack.c.bf16 %v1788_v38, %v1788_v38 }
 0xa40   : > { %3067 = vmatmul.mubr.msk.bf16.vlgmr.msra.gmra.mxu1 %vm1132_vm5, %v1790_v39 }
 0xa41   : > { %3078 = vmatprep.mubr.msk.bf16.mxu1 %vm3323_vm4, %v3322_v40  ;;  %3077 = vmatpush3.bf16.msra.mxu1 %v1895_v45 }
 0xa42   : > { %3088 = vmatprep.subr.bf16.mxu1 %v3322_v40 }
 0xa68   : > { %v1882_v8 = vpop.f32.mrf.mxu0 }
 0xa6a   : > { %v3074_v41 = vpop.f32.mrf.mxu0 }
 0xa6c   : > { %v1885_v42 = vpop.f32.mrf.mxu0 }
 0xa6e   : > { %v3075_v43 = vpop.f32.mrf.mxu0 }
 0xaf6   : > { %v1984_v46 = vpop.f32.mrf.mxu0 }
 0xaf7   : > { %v2040_v47 = vsel %vm1132_vm5, %v1984_v46, -inf }
 0xaf8   : > { %2041 = vmax.xlane.f32.xlu0 %v2040_v47  ;;  %v3086_v48 = vpop.f32.mrf.mxu0 }
 0xafa   : > { %v1987_v49 = vpop.f32.mrf.mxu0 }
 0xafc   : > { %v3087_v50 = vpop.f32.mrf.mxu0 }
 0xb00   : > { %v1834_v52 = vpop.f32.mrf.mxu1 }
 0xb01   : > { %v1888_v53 = vpack.c.bf16 %v1882_v8, %v1834_v52 }
 0xb02   : > { %v3068_v54 = vpop.f32.mrf.mxu1 }
 0xb03   : > { %3079 = vmatmul.mubr.msk.bf16.vlgmr.msra.gmra.mxu1 %vm1132_vm5, %v1888_v53 }
 0xb04   : > { %3089 = vmatpush3.bf16.xpose.msra.mxu1 %v1998_v56  ;;  %v1837_v57 = vpop.f32.mrf.mxu1  ;;  %3090 = vmatprep.mubr.msk.bf16.mxu1 %vm3323_vm4, %v3322_v40 }
 0xb05   : > { %3100 = vmatprep.subr.bf16.mxu1 %v3322_v40 }
 0xb06   : > { %v3069_v59 = vpop.f32.mrf.mxu1 }
 0xb0b   : > { %3091 = vmatmul.mubr.msk.bf16.vlgmr.msra.gmra.mxu1 %vm1132_vm5, %v1991_v60 }
 0xb0c   : > { %3102 = vmatprep.mubr.msk.bf16.mxu1 %vm3323_vm4, %v3322_v40 }
 0xb81   : > { %v2042_v61 = vpop.xlane.xlu0 %2041 }
 0xb82   : > { %v2046_v62 = vsub.f32 %v1984_v46, %v2042_v61  ;;  %v2878_v46 = vld [vmem:[%s3946_s5] ss:$0 sm:$0xff] }
 0xb84   : > { %v2048_v0 = vmul.f32 1.442695, %v2046_v62 }
 0xb86   : > { %3241 = vpow2.f32 %v2048_v0 }
 0xb93   : > { %v3242_v1 = vpop.eup %3241 }
 0xb94   : > { %v2052_v2 = vsel %vm1132_vm5, %v3242_v1, 0.0 }
 0xb95   : > { %2053 = vadd.xlane.f32.xlu0 %v2052_v2 }
 0xbc3   : > { %v1931_v5 = vpop.f32.mrf.mxu1 }
 0xbc4   : > { %v1938_v6 = vadd.f32 %v1931_v5, %v1662_v4  ;;  %v3203_v5 = vld [vmem:[%s3518_s8 + $0x8] sm:$0xff]  }
 0xbc5   : > { %v3080_v7 = vpop.f32.mrf.mxu1 }
 0xbc7   : > { %v1934_v13 = vpop.f32.mrf.mxu1 }
 0xbc8   : > { %v1939_v14 = vadd.f32 %v1934_v13, %v1665_v10 }
 0xbc9   : > { %v3081_v15 = vpop.f32.mrf.mxu1 }
 0xbcb   : > { %v2034_v11 = vpop.f32.mrf.mxu1 }
 0xbcc   : > { %v2043_v16 = vsel %vm1132_vm5, %v2034_v11, -inf }
 0xbcd   : > { %2044 = vmax.xlane.f32.xlu1 %v2043_v16  ;;  %v3092_v17 = vpop.f32.mrf.mxu1 }
 0xbcf   : > { %v2037_v18 = vpop.f32.mrf.mxu1 }
 0xbd0   : > { %v2879_v18 = vld [vmem:[%s883_s19] ss:$0 sm:$0xff]  ;;  %s3951_s19 = sld [smem:[#allocation20_spill]] (!%p2894_p6) }
 0xbd1   : > { %v3093_v19 = vpop.f32.mrf.mxu1 }
 0xbde   : > { %2112 = vrot.lane.b32.xlu1 %v3602_v3, %s3334_s24 }
 0xc1e   : > { %v2054_v23 = vpop.xlane.xlu0 %2053 }
 0xc56   : > { %v2045_v55 = vpop.xlane.xlu1 %2044 }
 0xc57   : > { %v2047_v9 = vsub.f32 %v2034_v11, %v2045_v55 }
 0xc59   : > { %v2050_v20 = vmul.f32 1.442695, %v2047_v9 }
 0xc5a   : > { %v2113_v21 = vpop.permute.xlu1 %2112 }
 0xc5b   : > { %3243 = vpow2.f32 %v2050_v20  ;;  %v2118_v58 = vsel %vm1257_vm6, %v2113_v21, 0  ;;  %v2880_v20 = vld [vmem:[%s886_s4] ss:$0 sm:$0xff] }
 0xc5c   : > { %3101 = vmatpush3.bf16.msra.mxu1 %v2118_v58  ;;  %3245 = vrcp.f32 %v2054_v23  ;;  %v3205_v23 = vld [vmem:[%s3528_s6 + $0x38] sm:$0xff]  }
 0xc5d   : > { %3112 = vmatprep.subr.bf16.mxu1 %v3322_v40 }
 0xc68   : > { %v3244_v12 = vpop.eup %3243 }
 0xc69   : > { %v2055_v22 = vsel %vm1132_vm5, %v3244_v12, 0.0  ;;  %v3246_v24 = vpop.eup %3245 }
 0xc6a   : > { %2056 = vadd.xlane.f32.xlu0 %v2055_v22  ;;  %v2060_v27 = vmul.f32 %v3246_v24, %v3242_v1  ;;  %v3206_v24 = vld [vmem:[%s3528_s6 + $0x30] sm:$0xff]  }
 0xc6c   : > { %v2062_v30 = vpack.c.bf16 %v2060_v27, %v2060_v27  ;;  %v3208_v27 = vld [vmem:[%s3528_s6 + $0x20] sm:$0xff]  }
 0xc80   : > { %2064 = vrot.lane.b32.xlu0 %v3599_v63, %s3334_s24 }
 0xcf3   : > { %v2057_v3 = vpop.xlane.xlu0 %2056 }
 0xcf4   : > { %3247 = vrcp.f32 %v2057_v3  ;;  %v3207_v3 = vld [vmem:[%s3528_s6 + $0x28] sm:$0xff]  }
 0xcf7   : > { %v2065_v28 = vpop.permute.xlu0 %2064 }
 0xcf8   : > { %v2070_v29 = vsel %vm1257_vm6, %v2065_v28, 0  ;;  %v3209_v28 = vld [vmem:[%s3528_s6 + $0x18] sm:$0xff]  }
 0xcf9   : > { %3095 = vmatpush3.bf16.msra.mxu0 %v2070_v29  ;;  %v3210_v29 = vld [vmem:[%s3528_s6 + $0x10] sm:$0xff]  }
 0xcfa   : > { %3106 = vmatprep.subr.bf16.mxu0 %v3322_v40 }
 0xcfc   : > { %3097 = vmatmul.mubr.msk.bf16.vlgmr.msra.gmra.mxu0 %vm1132_vm5, %v2062_v30  ;;  %v3211_v30 = vld [vmem:[%s3528_s6 + $0x8] sm:$0xff]  }
 0xcfd   : > { %3108 = vmatprep.mubr.msk.bf16.mxu0 %vm3323_vm4, %v3322_v40  ;;  %3107 = vmatpush3.bf16.msra.mxu0 %v2167_v34 }
 0xcfe   : > { %3120 = vmatprep.subr.bf16.mxu0 %v3322_v40 }
 0xd01   : > { %v3248_v63 = vpop.eup %3247 }
 0xd02   : > { %v2061_v31 = vmul.f32 %v3248_v63, %v3244_v12  ;;  %v3212_v63 = vld [vmem:[%s3528_s6] sm:$0xff]  }
 0xd04   : > { %v2063_v32 = vpack.c.bf16 %v2061_v31, %v2061_v31  ;;  %v2881_v31 = vld [vmem:[%s3947_s2] ss:$0 sm:$0xff] }
 0xd06   : > { %3103 = vmatmul.mubr.msk.bf16.vlgmr.msra.gmra.mxu1 %vm1132_vm5, %v2063_v32 }
 0xd07   : > { %3116 = vmatprep.mubr.msk.bf16.mxu1 %vm3323_vm4, %v3322_v40  ;;  %3113 = vmatpush3.bf16.msra.mxu1 %v3203_v5 }
 0xd08   : > { %3114 = vmatprep.subr.bf16.mxu1 %v3322_v40 }
 0xdbc   : > { %v2106_v35 = vpop.f32.mrf.mxu0 }
 0xdbe   : > { %v3098_v36 = vpop.f32.mrf.mxu0 }
 0xdc0   : > { %v2109_v37 = vpop.f32.mrf.mxu0 }
 0xdc2   : > { %v3099_v38 = vpop.f32.mrf.mxu0 }
 0xdc6   : > { %v2154_v39 = vpop.f32.mrf.mxu1 }
 0xdc7   : > { %v2160_v8 = vpack.c.bf16 %v2154_v39, %v2106_v35 }
 0xdc8   : > { %v3104_v41 = vpop.f32.mrf.mxu1 }
 0xdc9   : > { %3109 = vmatmul.mubr.msk.bf16.vlgmr.msra.gmra.mxu0 %vm1132_vm5, %v2160_v8 }
 0xdca   : > { %v2157_v42 = vpop.f32.mrf.mxu1  ;;  %3136 = vmatprep.mubr.msk.bf16.mxu0 %vm3323_vm4, %v3322_v40  ;;  %3121 = vmatpush3.bf16.msra.mxu0 %v3205_v23 }
 0xdcb   : > { %3122 = vmatprep.subr.bf16.mxu0 %v3322_v40 }
 0xdcc   : > { %v3105_v43 = vpop.f32.mrf.mxu1 }
 0xdce   : > { %3123 = vmatpush3.bf16.msra.mxu0 %v3206_v24 }
 0xdcf   : > { %3124 = vmatprep.subr.bf16.mxu0 %v3322_v40 }
 0xdd2   : > { %3125 = vmatpush3.bf16.msra.mxu0 %v3207_v3 }
 0xdd3   : > { %3126 = vmatprep.subr.bf16.mxu0 %v3322_v40 }
 0xdd6   : > { %3127 = vmatpush3.bf16.msra.mxu0 %v3208_v27 }
 0xdd7   : > { %3128 = vmatprep.subr.bf16.mxu0 %v3322_v40 }
 0xdda   : > { %3129 = vmatpush3.bf16.msra.mxu0 %v3209_v28 }
 0xddb   : > { %3130 = vmatprep.subr.bf16.mxu0 %v3322_v40 }
 0xdde   : > { %3131 = vmatpush3.bf16.msra.mxu0 %v3210_v29  ;;  %v2885_v29 = vld [vmem:[%s3948_s1] ss:$0 sm:$0xff] }
 0xddf   : > { %3132 = vmatprep.subr.bf16.mxu0 %v3322_v40 }
 0xde2   : > { %3133 = vmatpush3.bf16.msra.mxu0 %v3211_v30 }
 0xde3   : > { %3134 = vmatprep.subr.bf16.mxu0 %v3322_v40 }
 0xde6   : > { %3135 = vmatpush3.bf16.msra.mxu0 %v3212_v63 }
 0xe89   : > { %v2203_v44 = vpop.f32.mrf.mxu0 }
 0xe8a   : > { %v2210_v45 = vadd.f32 %v2203_v44, %v1938_v6  ;;  %v3204_v6 = vld [vmem:[%s3518_s8] sm:$0xff]  }
 0xe8b   : > { %v3110_v47 = vpop.f32.mrf.mxu0  ;;  %3115 = vmatpush3.bf16.msra.mxu1 %v3204_v6 }
 0xe8c   : > { %v2212_v48 = vadd.f32 %v2210_v45, %v3559_v25 }
 0xe8d   : > { %v2206_v49 = vpop.f32.mrf.mxu0 }
 0xe8e   : > { %v3784_v50 = vadd.f32 %v2878_v46, %v2212_v48  ;;  %v2211_v51 = vadd.f32 %v2206_v49, %v1939_v14 }
 0xe8f   : > { %v3111_v52 = vpop.f32.mrf.mxu0 }
 0xe90   : > { %v2213_v53 = vadd.f32 %v2211_v51, %v3561_v26  ;;  %v2225_v54 = vsel %vm1005_vm3, %v3784_v50, 0.0 }
 0xe91   : > { %2226 = vadd.xlane.f32.xlu1 %v2225_v54 }
 0xe92   : > { %v3789_v56 = vadd.f32 %v2878_v46, %v2213_v53 }
 0xe94   : > { %v2228_v57 = vsel %vm1005_vm3, %v3789_v56, 0.0 }
 0xe95   : > { %2229 = vadd.xlane.f32.xlu0 %v2228_v57 }
 0xf1a   : > { %v2227_v25 = vpop.xlane.xlu1 %2226 }
 0xf1b   : > { %v2231_v59 = vmul.f32 0.03125, %v2227_v25 }
 0xf1d   : > { %v2233_v60 = vsub.f32 %v3784_v50, %v2231_v59 }
 0xf1e   : > { %v2230_v61 = vpop.xlane.xlu0 %2229 }
 0xf1f   : > { %v2232_v62 = vmul.f32 0.03125, %v2230_v61  ;;  %v2235_v0 = vmul.f32 %v2233_v60, %v2233_v60 }
 0xf21   : > { %v2234_v26 = vsub.f32 %v3789_v56, %v2232_v62  ;;  %v2237_v1 = vsel %vm1005_vm3, %v2235_v0, 0.0 }
 0xf22   : > { %2238 = vadd.xlane.f32.xlu0 %v2237_v1 }
 0xf23   : > { %v2236_v2 = vmul.f32 %v2234_v26, %v2234_v26 }
 0xf25   : > { %v2240_v4 = vsel %vm1005_vm3, %v2236_v2, 0.0 }
 0xf26   : > { %2241 = vadd.xlane.f32.xlu1 %v2240_v4 }
 0xfab   : > { %v2239_v7 = vpop.xlane.xlu0 %2238 }
 0xfac   : > { %v2243_v10 = vmul.f32 0.03125, %v2239_v7 }
 0xfae   : > { %v2245_v13 = vadd.f32 1e-05, %v2243_v10 }
 0xfaf   : > { %v2242_v14 = vpop.xlane.xlu1 %2241 }
 0xfb0   : > { %3249 = vrsqrt.f32 %v2245_v13  ;;  %v2244_v15 = vmul.f32 0.03125, %v2242_v14 }
 0xfb2   : > { %v2246_v11 = vadd.f32 1e-05, %v2244_v15 }
 0xfb4   : > { %3251 = vrsqrt.f32 %v2246_v11 }
 0xfbd   : > { %v3250_v16 = vpop.eup %3249 }
 0xfbe   : > { %v2249_v17 = vmul.f32 %v3250_v16, %v2233_v60 }
 0xfc0   : > { %v2257_v9 = vmul.f32 %v2879_v18, %v2249_v17 }
 0xfc1   : > { %v3252_v19 = vpop.eup %3251 }
 0xfc2   : > { %v2250_v55 = vmul.f32 %v3252_v19, %v2234_v26  ;;  %v2265_v58 = vadd.f32 %v2880_v20, %v2257_v9 }
 0xfc4   : > { %v2258_v21 = vmul.f32 %v2879_v18, %v2250_v55  ;;  %v3335_v18 = vmov -1.0  }
 0xfc6   : > { %v2266_v12 = vadd.f32 %v2880_v20, %v2258_v21 }
 0xfc8   : > { %v2267_v22 = vpack.c.bf16 %v2266_v12, %v2265_v58 }
 0xfca   : > { %3117 = vmatmul.mubr.msk.bf16.vlgmr.msra.gmra.mxu1 %vm1005_vm3, %v2267_v22 }
0x108a   : > { %v2328_v32 = vpop.f32.mrf.mxu1 }
0x108b   : > { %v2329_v33 = vadd.f32 %v2881_v31, %v2328_v32 }
0x108c   : > { %v3118_v34 = vpop.f32.mrf.mxu1 }
0x108d   : > { %v2337_v35 = vmul.f32 0.70710677, %v2329_v33  ;;  %v2335_v22 = vmul.f32 0.5, %v2329_v33 }
0x108e   : > { %v2331_v36 = vpop.f32.mrf.mxu1 }
0x108f   : > { %v2343_v37 = vand.u32 2147483647, %v2337_v35  ;;  %v2332_v38 = vadd.f32 %v2881_v31, %v2331_v36  ;;  %vm2339_vm7 = vcmp.ge.f32.partialorder %v2337_v35, 0.0 }
0x1090   : > { %v3119_v39 = vpop.f32.mrf.mxu1  ;;  %v2341_v19 = vsel %vm2339_vm7, 1.0, %v3335_v18 }
0x1091   : > { %v2345_v8 = vmul.f32 0.3275911, %v2343_v37  ;;  %v2338_v41 = vmul.f32 0.70710677, %v2332_v38  ;;  %v2369_v45 = vsub.f32 0.0, %v2343_v37  ;;  %v2336_v23 = vmul.f32 0.5, %v2332_v38 }
0x1093   : > { %v2347_v42 = vadd.f32 1.0, %v2345_v8  ;;  %v2344_v43 = vand.u32 2147483647, %v2338_v41  ;;  %v2371_v46 = vmul.f32 %v2369_v45, %v2343_v37  ;;  %vm2340_vm8 = vcmp.ge.f32.partialorder %v2338_v41, 0.0 }
0x1094   : > { %v2342_v21 = vsel %vm2340_vm8, 1.0, %v3335_v18 }
0x1095   : > { %3253 = vrcp.f32 %v2347_v42  ;;  %v2346_v40 = vmul.f32 0.3275911, %v2344_v43  ;;  %v2370_v47 = vsub.f32 0.0, %v2344_v43  ;;  %v2373_v51 = vmul.f32 1.442695, %v2371_v46 }
0x1097   : > { %v2348_v44 = vadd.f32 1.0, %v2346_v40  ;;  %v2372_v52 = vmul.f32 %v2370_v47, %v2344_v43 }
0x1099   : > { %3255 = vrcp.f32 %v2348_v44  ;;  %v2375_v59 = vmul.f32 1.442695, %v2372_v52 }
0x109a   : > { %3257 = vpow2.f32 %v2373_v51 }
0x109b   : > { %3259 = vpow2.f32 %v2375_v59 }
0x10a2   : > { %v3254_v48 = vpop.eup %3253 }
0x10a3   : > { %v2351_v49 = vmul.f32 1.0614054, %v3254_v48 }
0x10a5   : > { %v2353_v53 = vadd.f32 -1.4531521, %v2351_v49 }
0x10a6   : > { %v3256_v54 = vpop.eup %3255 }
0x10a7   : > { %v2355_v57 = vmul.f32 %v3254_v48, %v2353_v53  ;;  %v2352_v25 = vmul.f32 1.0614054, %v3256_v54  ;;  %v3258_v13 = vpop.eup %3257 }
0x10a8   : > { %v3260_v17 = vpop.eup %3259 }
0x10a9   : > { %v2357_v60 = vadd.f32 1.4214138, %v2355_v57  ;;  %v2354_v61 = vadd.f32 -1.4531521, %v2352_v25 }
0x10ab   : > { %v2359_v62 = vmul.f32 %v3254_v48, %v2357_v60  ;;  %v2356_v0 = vmul.f32 %v3256_v54, %v2354_v61 }
0x10ad   : > { %v2361_v26 = vadd.f32 -0.28449672, %v2359_v62  ;;  %v2358_v1 = vadd.f32 1.4214138, %v2356_v0 }
0x10af   : > { %v2363_v2 = vmul.f32 %v3254_v48, %v2361_v26  ;;  %v2360_v4 = vmul.f32 %v3256_v54, %v2358_v1 }
0x10b1   : > { %v2365_v5 = vadd.f32 0.2548296, %v2363_v2  ;;  %v2362_v6 = vadd.f32 -0.28449672, %v2360_v4 }
0x10b3   : > { %v2367_v7 = vmul.f32 %v3254_v48, %v2365_v5  ;;  %v2364_v10 = vmul.f32 %v3256_v54, %v2362_v6 }
0x10b5   : > { %v2377_v14 = vmul.f32 %v3258_v13, %v2367_v7  ;;  %v2366_v15 = vadd.f32 0.2548296, %v2364_v10 }
0x10b7   : > { %v2379_v11 = vsub.f32 1.0, %v2377_v14  ;;  %v2368_v16 = vmul.f32 %v3256_v54, %v2366_v15 }
0x10b9   : > { %v2381_v55 = vmul.f32 %v2379_v11, %v2341_v19  ;;  %v2378_v9 = vmul.f32 %v3260_v17, %v2368_v16 }
0x10bb   : > { %v2380_v20 = vsub.f32 1.0, %v2378_v9  ;;  %v2383_v58 = vadd.f32 1.0, %v2381_v55 }
0x10bd   : > { %v2382_v12 = vmul.f32 %v2380_v20, %v2342_v21  ;;  %v2385_v3 = vmul.f32 %v2383_v58, %v2335_v22 }
0x10bf   : > { %v2384_v24 = vadd.f32 1.0, %v2382_v12 }
0x10c1   : > { %v2386_v27 = vmul.f32 %v2384_v24, %v2336_v23 }
0x10c3   : > { %v2387_v28 = vpack.c.bf16 %v2386_v27, %v2385_v3 }
0x10c5   : > { %3137 = vmatmul.mubr.bf16.vlgmr.msra.gmra.mxu0 %v2387_v28 }
0x1185   : > { %v2493_v30 = vpop.f32.mrf.mxu0 }
0x1186   : > { %v2494_v63 = vadd.f32 %v2885_v29, %v2493_v30 }
0x1187   : > { %v3138_v31 = vpop.f32.mrf.mxu0 }
0x1188   : > { %v2500_v32 = vadd.f32 %v2494_v63, %v3784_v50 }
0x1189   : > { %v2496_v34 = vpop.f32.mrf.mxu0 }
0x118a   : > { %2502 = vst.msk [vmem:[#allocation2] sm:$0xff] %vm1005_vm3, %v2500_v32  ;;  %v2497_v33 = vadd.f32 %v2885_v29, %v2496_v34  ;;  %2507 = sbr.rel (%p2894_p6) target bundleno = 5014 (0x1396), region = 116 }
0x118b   : > { %v3139_v35 = vpop.f32.mrf.mxu0 }
0x118c   : > { %v2501_v36 = vadd.f32 %v2497_v33, %v3789_v56 }
0x118e   : > { %2503 = vst.msk [vmem:[#allocation2 + $0x8] sm:$0xff] %vm1005_vm3, %v2501_v36 }
0x118f   : > { %v3261_v48 = vld [vmem:[%s3909_s20 + $0x8] sm:$0xff]   ;;  %v3336_v49 = vmov 0.0   ;;  %vm3337_vm9 = vmmov 0   ;;  %v3262_v51 = vld [vmem:[%s3909_s20] sm:$0xff]  }
0x1190   : > { %3140 = vmatprep.subr.bf16.mxu0 %v3336_v49  ;;  %3144 = vmatprep.mubr.msk.bf16.mxu0 %vm3337_vm9, %v3336_v49  ;;  %v2895_v62 = vld [vmem:[%s3949_s18] ss:$0 sm:$0xff] }
0x1191   : > { %v2508_v37 = vld [vmem:[#allocation2] sm:$0xff]  ;;  %3141 = vmatpush3.bf16.msra.mxu0 %v3261_v48 }
0x1192   : > { %v2512_v39 = vsel %vm1005_vm3, %v2508_v37, 0.0  ;;  %3142 = vmatprep.subr.bf16.mxu0 %v3336_v49  ;;  %v2896_v2 = vld [vmem:[%s3950_s30] ss:$0 sm:$0xff] }
0x1193   : > { %2513 = vadd.xlane.f32.xlu0 %v2512_v39  ;;  %v2897_v13 = vld [vmem:[%s3951_s19] ss:$0 sm:$0xff] }
0x1195   : > { %v2509_v38 = vld [vmem:[#allocation2 + $0x8] sm:$0xff]  ;;  %3143 = vmatpush3.bf16.msra.mxu0 %v3262_v51 }
0x1196   : > { %v2515_v8 = vsel %vm1005_vm3, %v2509_v38, 0.0 }
0x1197   : > { %2516 = vadd.xlane.f32.xlu0 %v2515_v8 }
0x121c   : > { %v2514_v50 = vpop.xlane.xlu0 %2513 }
0x121d   : > { %v2518_v41 = vmul.f32 0.03125, %v2514_v50 }
0x121f   : > { %v2520_v42 = vsub.f32 %v2508_v37, %v2518_v41 }
0x1220   : > { %v2517_v43 = vpop.xlane.xlu0 %2516 }
0x1221   : > { %v2519_v40 = vmul.f32 0.03125, %v2517_v43  ;;  %v2522_v44 = vmul.f32 %v2520_v42, %v2520_v42 }
0x1223   : > { %v2521_v56 = vsub.f32 %v2509_v38, %v2519_v40  ;;  %v2524_v45 = vsel %vm1005_vm3, %v2522_v44, 0.0 }
0x1224   : > { %2525 = vadd.xlane.f32.xlu1 %v2524_v45 }
0x1225   : > { %v2523_v46 = vmul.f32 %v2521_v56, %v2521_v56 }
0x1227   : > { %v2527_v47 = vsel %vm1005_vm3, %v2523_v46, 0.0 }
0x1228   : > { %2528 = vadd.xlane.f32.xlu1 %v2527_v47 }
0x12ad   : > { %v2526_v52 = vpop.xlane.xlu1 %2525 }
0x12ae   : > { %v2530_v53 = vmul.f32 0.03125, %v2526_v52 }
0x12b0   : > { %v2532_v54 = vadd.f32 1e-06, %v2530_v53 }
0x12b1   : > { %v2529_v57 = vpop.xlane.xlu1 %2528 }
0x12b2   : > { %3263 = vrsqrt.f32 %v2532_v54  ;;  %v2531_v25 = vmul.f32 0.03125, %v2529_v57 }
0x12b4   : > { %v2533_v59 = vadd.f32 1e-06, %v2531_v25 }
0x12b6   : > { %3265 = vrsqrt.f32 %v2533_v59 }
0x12bf   : > { %v3264_v60 = vpop.eup %3263 }
0x12c0   : > { %v2536_v61 = vmul.f32 %v3264_v60, %v2520_v42 }
0x12c2   : > { %v2544_v1 = vmul.f32 %v2895_v62, %v2536_v61 }
0x12c3   : > { %v3266_v0 = vpop.eup %3265 }
0x12c4   : > { %v2537_v26 = vmul.f32 %v3266_v0, %v2521_v56  ;;  %v2552_v5 = vadd.f32 %v2896_v2, %v2544_v1 }
0x12c6   : > { %v2545_v4 = vmul.f32 %v2895_v62, %v2537_v26 }
0x12c8   : > { %v2553_v6 = vadd.f32 %v2896_v2, %v2545_v4 }
0x12ca   : > { %v2554_v7 = vpack.c.bf16 %v2553_v6, %v2552_v5 }
0x12cc   : > { %3145 = vmatmul.mubr.msk.bf16.vlgmr.msra.gmra.mxu0 %vm1005_vm3, %v2554_v7 }
0x138c   : > { %v2615_v10 = vpop.f32.mrf.mxu0 }
0x138d   : > { %v2616_v11 = vadd.f32 %v2897_v13, %v2615_v10 }
0x138e   : > { %v3146_v14 = vpop.f32.mrf.mxu0 }
0x1390   : > { %v2618_v15 = vpop.f32.mrf.mxu0 }
0x1391   : > { %v2619_v16 = vadd.f32 %v2897_v13, %v2618_v15 }
0x1392   : > { %v3147_v17 = vpop.f32.mrf.mxu0 }
0x1393   : > { %v2916_v18 = vpack.c.bf16 %v2619_v16, %v2616_v11 }
0x1395   : > { %2917 = vst [vmem:[#allocation3] sm:$0xff] %v2916_v18  }
0x1396 PF: > { %s3952_s4 = sld [smem:[#allocation7_spill]]  ;;  %s3338_s23 = smov [#allocation3]  }
0x1397   : > { %s2635_s1 = sshll.u32 %s3338_s23, 4  ;;  %s2636_s1 = int_to_ptr.vmem [resolvable:$true] %s2635_s1 }
0x1398   : > { %s3267_s3 = scalar_lea.vmem %s2636_s1, 128  ;;  %p3274_p11 = scmp.lt.s32.totalorder %s2636_s1, %s2636_s1 }
0x1399   : > { %p3268_p8 = scmp.ne.s32.totalorder %s2636_s1, %s3267_s3  ;;  %p3275_p12 = scmp.lt.s32.totalorder %s3267_s3, %s3267_s3 }
0x139b   : > { %p3276_p13 = por %p3275_p12, %p3274_p11 }
0x139c   : > { %s3953_s2 = sadd.s32 4294967295, %s3952_s4  }
0x139d   : > { %p3863_p7 = scmp.eq.s32.totalorder %s3953_s2, 1 }
0x139f   : > { %p3269_p9 = pnand %p3268_p8, %p3863_p7 }
0x13a1   : > { %p3270_p10 = pneg %p3269_p9 }
0x13a3   : > { %p3277_p0 = pnand %p3276_p13, %p3270_p10 }
0x13a5   : > { %3280 = shalt.err (!%p3277_p0)
}
0x13a6   : > { %s3339_s0 = smov 4   ;;  %s3955_s24 = sld [smem:[#allocation21_spill]] }
0x13ac   : > { %3149 = dma.vmem_to_hbm [thread:$0]  (%p3863_p7), %s2636_s1, 128, %s3955_s24, [#allocation4], %s3325_s26, %s3325_s26, %s3339_s0  }
0x13ad   : > { %3304 = dma.done.wait (%p3863_p7), [#allocation4], 128  }
0x13ae   : > { %3306 = vsyncadd (%p3863_p7), [#allocation4], 4294967168 }
0x13af PF: > { %s3956_s21 = sld [smem:[#allocation7_spill]] }
0x13b0   : > { %s3957_s3 = sld [smem:[#allocation6_spill]] }
0x13b1   : > { %s3958_s28 = sld [smem:[#allocation8_spill]] }
0x13b5   : > { %s33_s29 = sadd.s32 1, %s3956_s21  }
0x13b6   : > { %p30_p1 = scmp.ge.s32.totalorder %s33_s29, 4  }
0x13b8   :  { %32 = sbr.rel (!%p30_p1) target bundleno = 16 (0x10), region = 186 }
0x13bd   :  { %2651 = vsyncpa [#allocation4], 1 }
0x13be   :  { %2653 = vsyncpa [#allocation4 + $0x1], 1 }

</bundles_post_ra>
